<compile_context>
chip_gen: v5e
topology: v5e:2x2
jax: 0.10.0
libtpu: 0.0.40
codegen_flags: <defaults>
</compile_context>

<pallas_src>
import jax
import jax.numpy as jnp
from jax.experimental import pallas as pl
from jax.experimental.pallas import tpu as pltpu


def _cdiv(a, b):
    return -(-a // b)


def _round_up(a, m):
    return _cdiv(a, m) * m


def _disc_kernel(h_pl_ref, h_mi_ref, c_ref, wt_ref, out_ref):
    """One N-tile of the bilinear discriminator.

    wc[i, :] = W[0] @ c[i] == (c @ W[0].T)[i, :]; the wrapper passes W[0].T so
    this is a standard (M,K)x(K,N) contraction on the MXU.
    """
    c = c_ref[...]                                   # (TN, n_h), f32 or bf16
    wt = wt_ref[...]                                 # (n_h, n_h) == W[0].T
    wc = jnp.dot(c, wt, preferred_element_type=jnp.float32)      # (TN, n_h) f32

    sc1 = jnp.sum(h_pl_ref[...].astype(jnp.float32) * wc,
                  axis=-1, keepdims=True)                        # (TN, 1)
    sc2 = jnp.sum(h_mi_ref[...].astype(jnp.float32) * wc,
                  axis=-1, keepdims=True)                        # (TN, 1)

    # Lane-dense (2, TN) block -> unmasked stores. (The concat+T relayout is
    # free filler under the DMA slack of this memory-bound kernel.)
    out_ref[...] = jnp.concatenate([sc1, sc2], axis=1).T.astype(out_ref.dtype)


def _reference_forward(c, h_pl, h_mi, weight, bias, s_bias1=None, s_bias2=None):
    """Pure-JAX reference reproducing nn.Bilinear semantics (also the tiny-N
    fast path, where a pallas_call would be pure overhead)."""
    A = weight[0]                                                # (n_h, n_h)
    sc1 = jnp.einsum('ij,jk,ik->i', h_pl, A, c)[:, None] + bias[0]
    sc2 = jnp.einsum('ij,jk,ik->i', h_mi, A, c)[:, None] + bias[0]
    if s_bias1 is not None:
        sc1 = sc1 + s_bias1.reshape(-1, 1)
    if s_bias2 is not None:
        sc2 = sc2 + s_bias2.reshape(-1, 1)
    return jnp.concatenate([sc1, sc2], axis=0)


def discriminator_forward(c, h_pl, h_mi, weight, bias,
                          s_bias1=None, s_bias2=None,
                          tile_n=2048, min_pallas_n=256, min_pallas_nh=128):
    """Pallas implementation of Discriminator.forward.

    c, h_pl, h_mi : (N, n_h)
    weight        : (1, n_h, n_h)  (nn.Bilinear weight)
    bias          : (1,)           (nn.Bilinear bias)
    returns       : (2N, 1)
    """
    N, n_h = c.shape

    # Small-problem fast path: below these sizes the MXU tile is almost empty
    # and call/padding overhead dominates -> plain XLA einsum is faster.
    if N < min_pallas_n or n_h < min_pallas_nh:
        return _reference_forward(c, h_pl, h_mi, weight, bias, s_bias1, s_bias2)

    # Streaming dtype: keep whatever the producer gives us (bf16 halves HBM
    # bytes on this memory-bound kernel); matmul accumulates in f32 either way.
    stream_dtype = jnp.result_type(c.dtype, h_pl.dtype, h_mi.dtype)
    mxu_dtype = jnp.bfloat16 if stream_dtype == jnp.bfloat16 else jnp.float32
    in_itemsize = jnp.dtype(stream_dtype).itemsize

    # Pre-transpose W once (XLA, free at n_h x n_h) -> native (K, N) MXU RHS.
    w_t = jnp.asarray(weight).reshape(n_h, n_h).T.astype(mxu_dtype)

    # ---- VMEM-aware tile selection -------------------------------------
    try:
        info = pltpu.get_tpu_info()
        vmem_cap = int(getattr(info, "vmem_capacity_bytes", 64 * 1024 * 1024))
    except Exception:                       # pragma: no cover - conservative
        vmem_cap = 64 * 1024 * 1024         # v7x per-TC VMEM (smallest gen)

    w_itemsize = jnp.dtype(mxu_dtype).itemsize
    w_bytes = 2 * n_h * n_h * w_itemsize    # W^T (default double-buffered)
    # TODO(synk): single-buffer the resident W^T spec (pipeline_mode=
    # pl.Buffered(1)) to reclaim n_h^2 bytes for very large n_h.
    stream_budget = max(3 * 2 * 128 * n_h * in_itemsize,
                        int(0.5 * vmem_cap) - w_bytes)
    tn_vmem = stream_budget // (3 * 2 * n_h * in_itemsize)
    TN_cap = max(128, (min(tile_n, tn_vmem) // 128) * 128)

    grid_n = _cdiv(N, TN_cap)
    grid_n = max(grid_n, 2)                 # feed both v7x TensorCores
    if grid_n % 2 == 1:                     # balanced 2-way megacore sharding
        grid_n += 1
    TN = max(128, _round_up(_cdiv(N, grid_n), 128))
    grid_n = _cdiv(N, TN)
    N_pad = grid_n * TN

    def pad_rows(x):
        x = x.astype(stream_dtype)
        return x if N_pad == N else jnp.pad(x, ((0, N_pad - N), (0, 0)))

    h_pl_p, h_mi_p, c_p = pad_rows(h_pl), pad_rows(h_mi), pad_rows(c)

    # VMEM: 3 streams x 2 pipeline buffers + resident W^T + small output.
    vmem_need = 3 * 2 * TN * n_h * in_itemsize + w_bytes + 2 * 2 * TN * 4
    vmem_limit = int(min(0.9 * vmem_cap,
                         max(32 * 1024 * 1024, vmem_need + (8 << 20))))
    vmem_limit = max(vmem_limit, vmem_need + (1 << 20))

    cost = pl.CostEstimate(
        flops=2 * N_pad * n_h * n_h + 4 * N_pad * n_h,
        transcendentals=0,
        bytes_accessed=(3 * N_pad * n_h * in_itemsize
                        + n_h * n_h * w_itemsize + 2 * N_pad * 4),
    )

    scores = pl.pallas_call(
        _disc_kernel,
        out_shape=jax.ShapeDtypeStruct((2, N_pad), jnp.float32),
        grid_spec=pltpu.PrefetchScalarGridSpec(
            num_scalar_prefetch=0,
            grid=(grid_n,),
            in_specs=[
                pl.BlockSpec((TN, n_h), lambda i: (i, 0)),    # h_pl tile
                pl.BlockSpec((TN, n_h), lambda i: (i, 0)),    # h_mi tile
                pl.BlockSpec((TN, n_h), lambda i: (i, 0)),    # c tile
                pl.BlockSpec((n_h, n_h), lambda i: (0, 0)),   # W^T, VMEM-resident
            ],
            out_specs=pl.BlockSpec((2, TN), lambda i: (0, i)),
        ),
        compiler_params=pltpu.CompilerParams(
            dimension_semantics=("parallel",),
            vmem_limit_bytes=vmem_limit,
        ),
        cost_estimate=cost,
    )(h_pl_p, h_mi_p, c_p, w_t)

    # Bias + optional additive sample biases: cheap plain-JAX glue.
    sc1 = scores[0, :N] + bias[0]
    sc2 = scores[1, :N] + bias[0]
    if s_bias1 is not None:
        sc1 = sc1 + jnp.ravel(s_bias1)
    if s_bias2 is not None:
        sc2 = sc2 + jnp.ravel(s_bias2)
    return jnp.concatenate([sc1, sc2], axis=0)[:, None]           # (2N, 1)


if __name__ == "__main__":
    key = jax.random.PRNGKey(0)

    # --- small demo shapes consistent with the module (fast-path branch) ---
    N, n_h = 8, 32
    k_c, k_pl, k_mi, k_w, k_rest = jax.random.split(key, 5)

    c    = jax.random.normal(k_c,  (N, n_h), dtype=jnp.float32)
    h_pl = jax.random.normal(k_pl, (N, n_h), dtype=jnp.float32)
    h_mi = jax.random.normal(k_mi, (N, n_h), dtype=jnp.float32)

    # Deterministic param init mirroring Discriminator.weights_init:
    # xavier_uniform_ on the Bilinear weight, bias filled with 0.0.
    fan_in, fan_out = n_h * n_h, 1 * n_h
    bound = (6.0 / (fan_in + fan_out)) ** 0.5
    weight = jax.random.uniform(k_w, (1, n_h, n_h),
                                minval=-bound, maxval=bound, dtype=jnp.float32)
    bias = jnp.zeros((1,), dtype=jnp.float32)

    logits = jax.block_until_ready(discriminator_forward(c, h_pl, h_mi, weight, bias))
    ref = _reference_forward(c, h_pl, h_mi, weight, bias)
    assert logits.shape == (2 * N, 1)
    assert jnp.allclose(logits, ref, atol=1e-4, rtol=1e-4), "mismatch (small case)"

    # --- larger case exercising the Pallas N-tiled, padded, multi-grid path ---
    N2, n_h2 = 1000, 128
    k_c2, k_pl2, k_mi2, k_w2, k_b1, k_b2 = jax.random.split(k_rest, 6)
    c2    = jax.random.normal(k_c2,  (N2, n_h2), dtype=jnp.float32)
    h_pl2 = jax.random.normal(k_pl2, (N2, n_h2), dtype=jnp.float32)
    h_mi2 = jax.random.normal(k_mi2, (N2, n_h2), dtype=jnp.float32)
    bound2 = (6.0 / (n_h2 * n_h2 + n_h2)) ** 0.5
    weight2 = jax.random.uniform(k_w2, (1, n_h2, n_h2),
                                 minval=-bound2, maxval=bound2, dtype=jnp.float32)
    bias2 = jnp.zeros((1,), dtype=jnp.float32)
    sb1 = jax.random.normal(k_b1, (N2, 1), dtype=jnp.float32)
    sb2 = jax.random.normal(k_b2, (N2, 1), dtype=jnp.float32)

    logits2 = jax.block_until_ready(
        discriminator_forward(c2, h_pl2, h_mi2, weight2, bias2,
                              s_bias1=sb1, s_bias2=sb2))
    ref2 = _reference_forward(c2, h_pl2, h_mi2, weight2, bias2, sb1, sb2)
    assert logits2.shape == (2 * N2, 1)
    assert jnp.allclose(logits2, ref2, atol=1e-3, rtol=1e-3), "mismatch (tiled case)"

    print("KERNEL_OK")
</pallas_src>

<mosaic_0001>
module attributes {stable_mosaic.version = 11 : i64} {
  func.func @_disc_kernel(%arg0: i32, %arg1: memref<512x128xf32, #tpu.memory_space<vmem>>, %arg2: memref<512x128xf32, #tpu.memory_space<vmem>>, %arg3: memref<512x128xf32, #tpu.memory_space<vmem>>, %arg4: memref<128x128xf32, #tpu.memory_space<vmem>>, %arg5: memref<2x512xf32, #tpu.memory_space<vmem>>) attributes {dimension_semantics = [#tpu.dimension_semantics<parallel>], iteration_bounds = array<i64: 2>, scalar_prefetch = 0 : i64, scratch_operands = 0 : i64, tpu.core_type = #tpu.core_type<tc>, window_params = [{transform_indices = @transform_0, window_bounds = array<i64: 512, 128>}, {transform_indices = @transform_1, window_bounds = array<i64: 512, 128>}, {transform_indices = @transform_2, window_bounds = array<i64: 512, 128>}, {pipeline_mode = #tpu.pipeline_mode<synchronous>, transform_indices = @transform_3, window_bounds = array<i64: 128, 128>}, {transform_indices = @transform_4, window_bounds = array<i64: 2, 512>}]} {
    %c0 = arith.constant 0 : index
    %c0_0 = arith.constant 0 : index
    %0 = vector.load %arg3[%c0, %c0_0] : memref<512x128xf32, #tpu.memory_space<vmem>>, vector<512x128xf32>
    %c0_1 = arith.constant 0 : index
    %c0_2 = arith.constant 0 : index
    %1 = vector.load %arg4[%c0_1, %c0_2] : memref<128x128xf32, #tpu.memory_space<vmem>>, vector<128x128xf32>
    %cst = arith.constant dense<0.000000e+00> : vector<512x128xf32>
    %2 = tpu.matmul %0, %1, %cst {dimension_numbers = #tpu.dot_dimension_numbers<[1], [0], [0], [1], [0, 0, 1, 1], [], []>} : vector<512x128xf32>, vector<128x128xf32>, vector<512x128xf32> -> vector<512x128xf32>
    %c0_3 = arith.constant 0 : index
    %c0_4 = arith.constant 0 : index
    %3 = vector.load %arg1[%c0_3, %c0_4] : memref<512x128xf32, #tpu.memory_space<vmem>>, vector<512x128xf32>
    %4 = arith.mulf %3, %2 : vector<512x128xf32>
    %cst_5 = arith.constant dense<0.000000e+00> : vector<512xf32>
    %5 = vector.multi_reduction <add>, %4, %cst_5 [1] : vector<512x128xf32> to vector<512xf32>
    %6 = vector.shape_cast %5 : vector<512xf32> to vector<512x1xf32>
    %c0_6 = arith.constant 0 : index
    %c0_7 = arith.constant 0 : index
    %7 = vector.load %arg2[%c0_6, %c0_7] : memref<512x128xf32, #tpu.memory_space<vmem>>, vector<512x128xf32>
    %8 = arith.mulf %7, %2 : vector<512x128xf32>
    %cst_8 = arith.constant dense<0.000000e+00> : vector<512xf32>
    %9 = vector.multi_reduction <add>, %8, %cst_8 [1] : vector<512x128xf32> to vector<512xf32>
    %10 = vector.shape_cast %9 : vector<512xf32> to vector<512x1xf32>
    %11 = tpu.concatenate %6, %10 in 1 : vector<512x1xf32>, vector<512x1xf32> -> vector<512x2xf32>
    %12 = tpu.transpose %11, [1, 0] : vector<512x2xf32> -> vector<2x512xf32>
    %c0_9 = arith.constant 0 : index
    %c0_10 = arith.constant 0 : index
    %13 = vector.load %arg5[%c0_9, %c0_10] : memref<2x512xf32, #tpu.memory_space<vmem>>, vector<2x512xf32>
    tpu.vector_store %arg5[%c0_9, %c0_10], %12 {strides = array<i32>} : memref<2x512xf32, #tpu.memory_space<vmem>>, vector<2x512xf32>,
    return
  }
  func.func @transform_0(%arg0: i32) -> (i32, i32) {
    %c0_i32 = arith.constant 0 : i32
    %c0_i32_0 = arith.constant 0 : i32
    return %arg0, %c0_i32 : i32, i32
  }
  func.func @transform_1(%arg0: i32) -> (i32, i32) {
    %c0_i32 = arith.constant 0 : i32
    %c0_i32_0 = arith.constant 0 : i32
    return %arg0, %c0_i32 : i32, i32
  }
  func.func @transform_2(%arg0: i32) -> (i32, i32) {
    %c0_i32 = arith.constant 0 : i32
    %c0_i32_0 = arith.constant 0 : i32
    return %arg0, %c0_i32 : i32, i32
  }
  func.func @transform_3(%arg0: i32) -> (i32, i32) {
    %c0_i32 = arith.constant 0 : i32
    %c0_i32_0 = arith.constant 0 : i32
    %c0_i32_1 = arith.constant 0 : i32
    return %c0_i32, %c0_i32_0 : i32, i32
  }
  func.func @transform_4(%arg0: i32) -> (i32, i32) {
    %c0_i32 = arith.constant 0 : i32
    %c0_i32_0 = arith.constant 0 : i32
    return %c0_i32, %arg0 : i32, i32
  }
}

</mosaic_0001>

<bundles_post_ra>
// kernel: tpu_custom_call.1
= control target key start
LH: loop header
LB: loop body
LE: loop exit
PB: predicated region body
PF: predicated region fallthrough
CT: control target
= control target key end

     0   :  { %s2531_s0 = inlined_call_operand.hbm [shape: f32[1024,128], index: 0, kind: input, shape index: {}]   ;;  %s2532_s1 = inlined_call_operand.hbm [shape: f32[1024,128], index: 1, kind: input, shape index: {}]   ;;  %s2533_s2 = inlined_call_operand.hbm [shape: f32[1024,128], index: 2, kind: input, shape index: {}]   ;;  %s2534_s3 = inlined_call_operand.hbm [shape: f32[128,128], index: 3, kind: input, shape index: {}]   ;;  %s2535_s4 = inlined_call_operand.hbm [shape: f32[2,1024], index: 4, kind: output, shape index: {}]  }
   0x1   :  { %2539 = sst [smem:[#allocation23_spill]] %s2532_s1 }
   0x2   :  { %2540 = sst [smem:[#allocation24_spill]] %s2534_s3 }
   0x3   :  { %9 = vsyncpa [#allocation3], 0 }
   0x4   :  { %11 = vsyncpa [#allocation3 + $0x1], 0 }
   0x5   :  { %12 = vsyncpa [#allocation6], 0 }
   0x6   :  { %14 = vsyncpa [#allocation6 + $0x1], 0 }
   0x7   :  { %15 = vsyncpa [#allocation9], 0 }
   0x8   :  { %16 = vsyncpa [#allocation4], 0 }
   0x9   :  { %18 = vsyncpa [#allocation4 + $0x1], 0  ;;  %s1838_s15 = smov 0   ;;  %s1840_s16 = smov 0  }
   0xa   :  { %s1842_s17 = smov 0   ;;  %s1844_s18 = smov 0  }
   0xb LB: > { %s1859_s19 = sadd.s32 1, %s1808_s18   ;;  %s31_s20 = sadd.s32 1, %s1804_s17  ;;  %s1808_s18 = sphi %s1844_s18, %s2564_s18   ;;  %s1804_s17 = sphi %s1842_s17, %s2568_s17   ;;  %s1800_s16 = sphi %s1840_s16, %s2567_s16   ;;  %s1796_s15 = sphi %s1838_s15, %s2566_s15  }
   0xc   : > { %2541 = sst [smem:[#allocation15_spill]] %s1859_s19  ;;  %s28_s21 = ssub.s32 %s1808_s18, %s1859_s19 }
   0xd   : > { %p38_p0 = scmp.ne.s32.totalorder %s1804_s17, %s1800_s16  ;;  %p29_p1 = scmp.eq.s32.totalorder %s28_s21, 0 }
   0xe   : > { %p39_p2 = scmp.eq.s32.totalorder %s1808_s18, 0  ;;  %p1576_p5 = scmp.lt.s32.totalorder %s1808_s18, 2 }
   0xf   : > { %s1868_s22 = scalar_select %p29_p1, %s1804_s17, %s31_s20  }
  0x10   : > { %p40_p3 = por %p39_p2, %p38_p0  ;;  %s2536_s23 = sand.u32 1, %s1804_s17  }
  0x11   : > { %2542 = sst [smem:[#allocation16_spill]] %s1868_s22  ;;  %s1878_s24 = sshll.u32 %s2536_s23, 9 }
  0x12   : > { %s1881_s25 = sshll.u32 %s1808_s18, 9  ;;  %p1883_p6 = pnand %p1576_p5, %p40_p3 }
  0x13   : > { %s203_s27 = sand.u32 1, %s1808_s18   ;;  %s2544_s1 = sld [smem:[#allocation23_spill]] }
  0x14   : > { %s207_s6 = scalar_lea.vmem [#allocation5], %s1878_s24  ;;  %s1893_s8 = scalar_lea.sflag [#allocation6], %s203_s27 }
  0x15   : > { %s215_s7 = sshll.u32 %s207_s6, 4  ;;  %p1618_p8 = pneg %p1883_p6  ;;  %s216_s7 = int_to_ptr.vmem [resolvable:$true] %s215_s7 }
  0x19   : > { %s212_s30 = scalar_lea.hbm %s2544_s1, %s1881_s25  ;;  %s1621_s13 = scalar_lea.hbm %s2544_s1, 1024 }
  0x1a   : > { %s213_s5 = sshll.u32 %s212_s30, 4  ;;  %s214_s5 = int_to_ptr.hbm [resolvable:$true] %s213_s5 }
  0x1b   : > { %s1614_s9 = sshra.s32 %s214_s5, 4  ;;  %s1615_s9 = int_to_ptr.hbm [resolvable:$true] %s1614_s9 }
  0x1c   : > { %s1616_s10 = scalar_lea.hbm %s1615_s9, 512  ;;  %p1622_p11 = scmp.lt.s32.totalorder %s1615_s9, %s2544_s1 }
  0x1d   : > { %p1617_p7 = scmp.ne.s32.totalorder %s1615_s9, %s1616_s10  ;;  %p1623_p12 = scmp.lt.s32.totalorder %s1621_s13, %s1616_s10 }
  0x1f   : > { %p1619_p9 = pnand %p1618_p8, %p1617_p7  ;;  %p1624_p13 = por %p1623_p12, %p1622_p11 }
  0x21   : > { %p1620_p10 = pneg %p1619_p9 }
  0x23   : > { %p1625_p1 = pnand %p1624_p13, %p1620_p10 }
  0x25   : > { %1628 = shalt.err (!%p1625_p1)
}
  0x26   : > { %s1810_s21 = smov 128   ;;  %s1811_s27 = smov 8  }
  0x27   : > { %1567 = dma.hbm_to_vmem [thread:$0]  (!%p1883_p6), %s214_s5, 8192, %s216_s7, %s1893_s8, %s1810_s21, %s1810_s21, %s1811_s27  }
  0x28   : > { %s1913_s28 = sadd.s32 4294967295, %s1808_s18   ;;  %s1469_s29 = sadd.s32 4294967294, %s1808_s18  }
  0x29   : > { %p44_p2 = scmp.ne.s32.totalorder %s1800_s16, %s1796_s15  ;;  %p45_p3 = scmp.eq.s32.totalorder %s1913_s28, 0 }
  0x2a   : > { %p141_p5 = scmp.eq.s32.totalorder %s1913_s28, 1  ;;  %p147_p7 = scmp.eq.s32.totalorder %s1469_s29, 1 }
  0x2b   : > { %p1922_p9 = por %p45_p3, %p44_p2  ;;  %p1470_p10 = scmp.ge.s32.totalorder %s1808_s18, 1 }
  0x2c   : > { %p1930_p11 = por %p141_p5, %p38_p0  ;;  %p1934_p12 = por %p147_p7, %p44_p2 }
  0x2d   : > { %p154_p13 = scmp.lt.s32.totalorder %s1808_s18, 3  ;;  %s2548_s3 = sld [smem:[#allocation24_spill]] }
  0x2e   : > { %s1812_s12 = smov [#allocation8]   ;;  %s190_s29 = scalar_lea.hbm %s2531_s0, %s1881_s25 }
  0x2f   : > { %p1942_p1 = pnand %p1470_p10, %p154_p13  ;;  %s167_s13 = sshll.u32 %s1812_s12, 4  ;;  %s168_s13 = int_to_ptr.vmem [resolvable:$true] %s167_s13 }
  0x30   : > { %s191_s7 = sshll.u32 %s190_s29, 4  ;;  %s185_s9 = scalar_lea.vmem [#allocation2], %s1878_s24  ;;  %s192_s7 = int_to_ptr.hbm [resolvable:$true] %s191_s7 }
  0x31   : > { %p1557_p0 = pneg %p1942_p1  ;;  %s193_s23 = sshll.u32 %s185_s9, 4  ;;  %s194_s23 = int_to_ptr.vmem [resolvable:$true] %s193_s23 }
  0x32   : > { %s2550_s12 = sand.u32 1, %s1804_s17   ;;  %s1681_s29 = scalar_lea.hbm %s2531_s0, 1024 }
  0x33   : > { %s165_s10 = sshll.u32 %s2548_s3, 4  ;;  %p1558_p2 = pnand %p1557_p0, %p45_p3  ;;  %s166_s10 = int_to_ptr.hbm [resolvable:$true] %s165_s10 }
  0x34   : > { %s182_s1 = scalar_lea.sflag [#allocation3], %s2550_s12  ;;  %s1674_s3 = sshra.s32 %s192_s7, 4  ;;  %s1675_s3 = int_to_ptr.hbm [resolvable:$true] %s1674_s3 }
  0x35   : > { %1560 = dma.hbm_to_vmem [thread:$0]  (!%p1558_p2), %s166_s10, 2048, %s168_s13, [#allocation9], %s1810_s21, %s1810_s21, %s1811_s27  }
  0x36   : > { %s1676_s22 = scalar_lea.hbm %s1675_s3, 512  ;;  %p1682_p13 = scmp.lt.s32.totalorder %s1675_s3, %s2531_s0 }
  0x37   : > { %p1677_p5 = scmp.ne.s32.totalorder %s1675_s3, %s1676_s22  ;;  %p1683_p0 = scmp.lt.s32.totalorder %s1681_s29, %s1676_s22 }
  0x39   : > { %p1679_p7 = pnand %p1677_p5, %p1618_p8  ;;  %p1684_p2 = por %p1683_p0, %p1682_p13 }
  0x3b   : > { %p1680_p10 = pneg %p1679_p7 }
  0x3d   : > { %p1685_p4 = pnand %p1684_p2, %p1680_p10 }
  0x3f   : > { %1688 = shalt.err (!%p1685_p4)
}
  0x40   : > { %1564 = dma.hbm_to_vmem [thread:$0]  (!%p1883_p6), %s192_s7, 8192, %s194_s23, %s182_s1, %s1810_s21, %s1810_s21, %s1811_s27  }
  0x41   : > { %s234_s12 = scalar_lea.hbm %s2533_s2, %s1881_s25  ;;  %s229_s19 = scalar_lea.vmem [#allocation7], %s1878_s24 }
  0x42   : > { %s235_s14 = sshll.u32 %s234_s12, 4  ;;  %s237_s3 = sshll.u32 %s229_s19, 4  ;;  %s236_s14 = int_to_ptr.hbm [resolvable:$true] %s235_s14  ;;  %s238_s3 = int_to_ptr.vmem [resolvable:$true] %s237_s3 }
  0x43   : > { %s1704_s22 = sshra.s32 %s236_s14, 4  ;;  %s1711_s1 = scalar_lea.hbm %s2533_s2, 1024  ;;  %s1705_s22 = int_to_ptr.hbm [resolvable:$true] %s1704_s22 }
  0x44   : > { %s1706_s20 = scalar_lea.hbm %s1705_s22, 512  ;;  %p1712_p10 = scmp.lt.s32.totalorder %s1705_s22, %s2533_s2 }
  0x45   : > { %p1707_p4 = scmp.ne.s32.totalorder %s1705_s22, %s1706_s20  ;;  %p1713_p13 = scmp.lt.s32.totalorder %s1711_s1, %s1706_s20 }
  0x47   : > { %p1709_p5 = pnand %p1707_p4, %p1618_p8  ;;  %p1714_p0 = por %p1713_p13, %p1712_p10 }
  0x49   : > { %p1710_p7 = pneg %p1709_p5 }
  0x4b   : > { %p1715_p2 = pnand %p1714_p0, %p1710_p7 }
  0x4d   : > { %1718 = shalt.err (!%p1715_p2)
}
  0x4e   : > { %1570 = dma.hbm_to_vmem [thread:$0]  (!%p1883_p6), %s236_s14, 8192, %s238_s3, %s1893_s8, %s1810_s21, %s1810_s21, %s1811_s27  }
  0x4f   : > { %249 = sbr.rel (%p1942_p1) target bundleno = 911 (0x38f), region = 36 }
  0x54   : > { %s1997_s24 = sand.u32 1, %s1800_s16  }
  0x55   : > { %s1483_s25 = sshll.u32 %s1997_s24, 9  ;;  %s252_s10 = scalar_lea.sflag [#allocation3], %s1997_s24 }
  0x56   : > { %s2001_s13 = scalar_lea.vmem [#allocation2], %s1483_s25 }
  0x57   : > { %1779 = dma.done.wait (%p1922_p9), %s252_s10, 8192  }
  0x58   : > { %1781 = vsyncadd (%p1922_p9), %s252_s10, 4294959104  ;;  %s261_s26 = sand.u32 1, %s1913_s28   ;;  %s2008_s21 = scalar_lea.vmem [#allocation5], %s1483_s25 }
  0x59   : > { %s262_s8 = scalar_lea.sflag [#allocation6], %s261_s26 }
  0x5a   : > { %1783 = dma.done.wait (%p1922_p9), %s262_s8, 16384  }
  0x5b   : > { %1785 = vsyncadd (%p1922_p9), %s262_s8, 4294950912  ;;  %s2014_s27 = scalar_lea.vmem [#allocation7], %s1483_s25 }
  0x5c   : > { %1787 = dma.done.wait (%p45_p3), [#allocation9], 2048  }
  0x5d   : > { %1789 = vsyncadd (%p45_p3), [#allocation9], 4294965248  ;;  %v399_v0 = vld [vmem:[#allocation8 + $0x78] sm:$0xff]  ;;  %v398_v1 = vld [vmem:[#allocation8 + $0x70] sm:$0xff]  ;;  %vm1121_vm0 = vcmask 7168   ;;  %s1487_s30 = sshll.u32 %s1997_s24, 3 }
  0x5e   : > { %400 = vmatpush.msra.mxu0 %v399_v0  ;;  %1497 = vmatpush.msra.mxu1 %v399_v0  ;;  %v397_v2 = vld [vmem:[#allocation8 + $0x68] sm:$0xff]  ;;  %v396_v3 = vld [vmem:[#allocation8 + $0x60] sm:$0xff]  ;;  %v395_v4 = vld [vmem:[#allocation8 + $0x58] sm:$0xff]  ;;  %s1496_s11 = sshll.u32 %s1913_s28, 3  ;;  %vm1321_vm1 = vcmask 1041408   ;;  %vm1323_vm2 = vcmask 1045508  }
  0x5f   : > { %1498 = vmatpush.msra.mxu2 %v399_v0  ;;  %1499 = vmatpush.msra.mxu3 %v399_v0  ;;  %v394_v5 = vld [vmem:[#allocation8 + $0x50] sm:$0xff]  ;;  %v393_v6 = vld [vmem:[#allocation8 + $0x48] sm:$0xff]  ;;  %v392_v7 = vld [vmem:[#allocation8 + $0x40] sm:$0xff]  ;;  %s1341_s19 = scalar_lea.hbm %s2535_s4, %s1496_s11  ;;  %s315_s3 = scalar_lea.vmem [#allocation10], %s1487_s30  ;;  %vm1325_vm3 = vcmask 1043456  }
  0x60   : > { %401 = vmatpush.msra.mxu0 %v398_v1  ;;  %1500 = vmatpush.msra.mxu1 %v398_v1  ;;  %v391_v8 = vld [vmem:[#allocation8 + $0x38] sm:$0xff]  ;;  %v390_v9 = vld [vmem:[#allocation8 + $0x30] sm:$0xff]  ;;  %v389_v10 = vld [vmem:[#allocation8 + $0x28] sm:$0xff]  ;;  %s1343_s22 = sshll.u32 %s315_s3, 4  ;;  %s1345_s20 = sshll.u32 %s1341_s19, 4  ;;  %s1344_s22 = int_to_ptr.vmem [resolvable:$true] %s1343_s22  ;;  %s1346_s20 = int_to_ptr.hbm [resolvable:$true] %s1345_s20 }
  0x61   : > { %1501 = vmatpush.msra.mxu2 %v398_v1  ;;  %1502 = vmatpush.msra.mxu3 %v398_v1  ;;  %v388_v11 = vld [vmem:[#allocation8 + $0x20] sm:$0xff]  ;;  %v387_v12 = vld [vmem:[#allocation8 + $0x18] sm:$0xff]  ;;  %v386_v13 = vld [vmem:[#allocation8 + $0x10] sm:$0xff]  ;;  %s1330_s28 = scalar_lea.sflag [#allocation4], %s1997_s24  ;;  %s1748_s29 = sshra.s32 %s1346_s20, 4  ;;  %s1749_s29 = int_to_ptr.hbm [resolvable:$true] %s1748_s29 }
  0x62   : > { %402 = vmatpush.msra.mxu0 %v397_v2  ;;  %1503 = vmatpush.msra.mxu1 %v397_v2  ;;  %v385_v14 = vld [vmem:[#allocation8 + $0x8] sm:$0xff]  ;;  %v384_v15 = vld [vmem:[#allocation8] sm:$0xff]  ;;  %v322_v24 = vld [vmem:[%s2014_s27 + $0x10] sm:$0xff]  ;;  %s1750_s9 = scalar_lea.hbm %s1749_s29, 8  ;;  %s1754_s7 = scalar_lea.hbm %s2535_s4, 16 }
  0x63   : > { %1504 = vmatpush.msra.mxu2 %v397_v2  ;;  %1505 = vmatpush.msra.mxu3 %v397_v2  ;;  %v320_v16 = vld [vmem:[%s2014_s27] sm:$0xff]  ;;  %v337_v20 = vld [vmem:[%s2014_s27 + $0x88] sm:$0xff]  ;;  %v338_v25 = vld [vmem:[%s2014_s27 + $0x90] sm:$0xff]  ;;  %p1751_p6 = scmp.ne.s32.totalorder %s1749_s29, %s1750_s9  ;;  %p1755_p9 = scmp.lt.s32.totalorder %s1749_s29, %s2535_s4 }
  0x64   : > { %403 = vmatpush.msra.mxu0 %v396_v3  ;;  %1506 = vmatpush.msra.mxu1 %v396_v3  ;;  %v336_v17 = vld [vmem:[%s2014_s27 + $0x80] sm:$0xff]  ;;  %v321_v21 = vld [vmem:[%s2014_s27 + $0x8] sm:$0xff]  ;;  %v370_v26 = vld [vmem:[%s2014_s27 + $0x190] sm:$0xff]  ;;  %p1756_p1 = scmp.lt.s32.totalorder %s1754_s7, %s1750_s9 }
  0x65   : > { %1507 = vmatpush.msra.mxu2 %v396_v3  ;;  %1508 = vmatpush.msra.mxu3 %v396_v3  ;;  %v352_v18 = vld [vmem:[%s2014_s27 + $0x100] sm:$0xff]  ;;  %v369_v22 = vld [vmem:[%s2014_s27 + $0x188] sm:$0xff]  ;;  %v354_v27 = vld [vmem:[%s2014_s27 + $0x110] sm:$0xff]  ;;  %p1752_p8 = pnand %p1751_p6, %p1930_p11 }
  0x66   : > { %404 = vmatpush.msra.mxu0 %v395_v4  ;;  %1509 = vmatpush.msra.mxu1 %v395_v4  ;;  %v368_v19 = vld [vmem:[%s2014_s27 + $0x180] sm:$0xff]  ;;  %v353_v23 = vld [vmem:[%s2014_s27 + $0x108] sm:$0xff]  ;;  %v339_v28 = vld [vmem:[%s2014_s27 + $0x98] sm:$0xff]  ;;  %p1757_p4 = por %p1756_p1, %p1755_p9 }
  0x67   : > { %1510 = vmatpush.msra.mxu2 %v395_v4  ;;  %1511 = vmatpush.msra.mxu3 %v395_v4  ;;  %v323_v29 = vld [vmem:[%s2014_s27 + $0x18] sm:$0xff]  ;;  %v324_v32 = vld [vmem:[%s2014_s27 + $0x20] sm:$0xff]  ;;  %v325_v36 = vld [vmem:[%s2014_s27 + $0x28] sm:$0xff]  ;;  %p1753_p3 = pneg %p1752_p8 }
  0x68   : > { %405 = vmatpush.msra.mxu0 %v394_v5  ;;  %1512 = vmatpush.msra.mxu1 %v394_v5  ;;  %v355_v30 = vld [vmem:[%s2014_s27 + $0x118] sm:$0xff]  ;;  %v340_v33 = vld [vmem:[%s2014_s27 + $0xa0] sm:$0xff]  ;;  %v341_v37 = vld [vmem:[%s2014_s27 + $0xa8] sm:$0xff] }
  0x69   : > { %1513 = vmatpush.msra.mxu2 %v394_v5  ;;  %1514 = vmatpush.msra.mxu3 %v394_v5  ;;  %v371_v31 = vld [vmem:[%s2014_s27 + $0x198] sm:$0xff]  ;;  %v372_v34 = vld [vmem:[%s2014_s27 + $0x1a0] sm:$0xff]  ;;  %v373_v38 = vld [vmem:[%s2014_s27 + $0x1a8] sm:$0xff]  ;;  %p1758_p5 = pnand %p1757_p4, %p1753_p3 }
  0x6a   : > { %406 = vmatpush.msra.mxu0 %v393_v6  ;;  %1515 = vmatpush.msra.mxu1 %v393_v6  ;;  %v356_v35 = vld [vmem:[%s2014_s27 + $0x120] sm:$0xff]  ;;  %v357_v39 = vld [vmem:[%s2014_s27 + $0x128] sm:$0xff]  ;;  %v326_v40 = vld [vmem:[%s2014_s27 + $0x30] sm:$0xff] }
  0x6b   : > { %1516 = vmatpush.msra.mxu2 %v393_v6  ;;  %1517 = vmatpush.msra.mxu3 %v393_v6  ;;  %v342_v41 = vld [vmem:[%s2014_s27 + $0xb0] sm:$0xff]  ;;  %v343_v44 = vld [vmem:[%s2014_s27 + $0xb8] sm:$0xff]  ;;  %v328_v48 = vld [vmem:[%s2014_s27 + $0x40] sm:$0xff] }
  0x6c   : > { %407 = vmatpush.msra.mxu0 %v392_v7  ;;  %1518 = vmatpush.msra.mxu1 %v392_v7  ;;  %v358_v42 = vld [vmem:[%s2014_s27 + $0x130] sm:$0xff]  ;;  %v327_v45 = vld [vmem:[%s2014_s27 + $0x38] sm:$0xff]  ;;  %v376_v49 = vld [vmem:[%s2014_s27 + $0x1c0] sm:$0xff] }
  0x6d   : > { %1519 = vmatpush.msra.mxu2 %v392_v7  ;;  %1520 = vmatpush.msra.mxu3 %v392_v7  ;;  %v374_v43 = vld [vmem:[%s2014_s27 + $0x1b0] sm:$0xff]  ;;  %v375_v46 = vld [vmem:[%s2014_s27 + $0x1b8] sm:$0xff]  ;;  %v344_v50 = vld [vmem:[%s2014_s27 + $0xc0] sm:$0xff] }
  0x6e   : > { %408 = vmatpush.msra.mxu0 %v391_v8  ;;  %1521 = vmatpush.msra.mxu1 %v391_v8  ;;  %v359_v47 = vld [vmem:[%s2014_s27 + $0x138] sm:$0xff]  ;;  %v360_v51 = vld [vmem:[%s2014_s27 + $0x140] sm:$0xff]  ;;  %v329_v61 = vld [vmem:[%s2014_s27 + $0x48] sm:$0xff] }
  0x6f   : > { %1522 = vmatpush.msra.mxu2 %v391_v8  ;;  %1523 = vmatpush.msra.mxu3 %v391_v8  ;;  %v881_v52 = vld [vmem:[%s2008_s21 + $0x80] sm:$0xff]  ;;  %v345_v62 = vld [vmem:[%s2014_s27 + $0xc8] sm:$0xff] }
  0x70   : > { %409 = vmatpush.msra.mxu0 %v390_v9  ;;  %1524 = vmatpush.msra.mxu1 %v390_v9  ;;  %v625_v53 = vld [vmem:[%s2001_s13 + $0x80] sm:$0xff]  ;;  %v626_v7 = vld [vmem:[%s2001_s13 + $0x88] sm:$0xff] }
  0x71   : > { %1525 = vmatpush.msra.mxu2 %v390_v9  ;;  %1526 = vmatpush.msra.mxu3 %v390_v9  ;;  %v609_v54 = vld [vmem:[%s2001_s13] sm:$0xff]  ;;  %v361_v8 = vld [vmem:[%s2014_s27 + $0x148] sm:$0xff] }
  0x72   : > { %410 = vmatpush.msra.mxu0 %v389_v10  ;;  %1527 = vmatpush.msra.mxu1 %v389_v10  ;;  %v865_v60 = vld [vmem:[%s2008_s21] sm:$0xff]  ;;  %v377_v9 = vld [vmem:[%s2014_s27 + $0x1c8] sm:$0xff] }
  0x73   : > { %1528 = vmatpush.msra.mxu2 %v389_v10  ;;  %1529 = vmatpush.msra.mxu3 %v389_v10  ;;  %v641_v63 = vld [vmem:[%s2001_s13 + $0x100] sm:$0xff]  ;;  %v658_v10 = vld [vmem:[%s2001_s13 + $0x188] sm:$0xff] }
  0x74   : > { %411 = vmatpush.msra.mxu0 %v388_v11  ;;  %1530 = vmatpush.msra.mxu1 %v388_v11  ;;  %v657_v0 = vld [vmem:[%s2001_s13 + $0x180] sm:$0xff] }
  0x75   : > { %1531 = vmatpush.msra.mxu2 %v388_v11  ;;  %1532 = vmatpush.msra.mxu3 %v388_v11 }
  0x76   : > { %412 = vmatpush.msra.mxu0 %v387_v12  ;;  %1533 = vmatpush.msra.mxu1 %v387_v12 }
  0x77   : > { %1534 = vmatpush.msra.mxu2 %v387_v12  ;;  %1535 = vmatpush.msra.mxu3 %v387_v12  ;;  %v897_v12 = vld [vmem:[%s2008_s21 + $0x100] sm:$0xff] }
  0x78   : > { %413 = vmatpush.msra.mxu0 %v386_v13  ;;  %1536 = vmatpush.msra.mxu1 %v386_v13 }
  0x79   : > { %1537 = vmatpush.msra.mxu2 %v386_v13  ;;  %1538 = vmatpush.msra.mxu3 %v386_v13 }
  0x7a   : > { %414 = vmatpush.msra.mxu0 %v385_v14  ;;  %1539 = vmatpush.msra.mxu1 %v385_v14 }
  0x7b   : > { %1540 = vmatpush.msra.mxu2 %v385_v14  ;;  %1541 = vmatpush.msra.mxu3 %v385_v14 }
  0x7c   : > { %415 = vmatpush.msra.mxu0 %v384_v15  ;;  %1542 = vmatpush.msra.mxu1 %v384_v15 }
  0x7d   : > { %416 = vmatmul.f32.vlgmr.msra.gmra.mxu0 %v320_v16  ;;  %464 = vmatmul.f32.vlgmr.msra.gmra.mxu1 %v336_v17  ;;  %v898_v17 = vld [vmem:[%s2008_s21 + $0x108] sm:$0xff] }
  0x7e   : > { %1543 = vmatpush.msra.mxu2 %v384_v15  ;;  %1544 = vmatpush.msra.mxu3 %v384_v15 }
  0x7f   : > { %512 = vmatmul.f32.vlgmr.msra.gmra.mxu2 %v352_v18  ;;  %560 = vmatmul.f32.vlgmr.msra.gmra.mxu3 %v368_v19  ;;  %v866_v19 = vld [vmem:[%s2008_s21 + $0x8] sm:$0xff] }
  0x85   : > { %467 = vmatmul.f32.gmra.mxu1 %v337_v20  ;;  %419 = vmatmul.f32.gmra.mxu0 %v321_v21  ;;  %v330_v20 = vld [vmem:[%s2014_s27 + $0x50] sm:$0xff] }
  0x86   : > { %v346_v21 = vld [vmem:[%s2014_s27 + $0xd0] sm:$0xff] }
  0x87   : > { %563 = vmatmul.f32.gmra.mxu3 %v369_v22  ;;  %515 = vmatmul.f32.gmra.mxu2 %v353_v23  ;;  %v610_v22 = vld [vmem:[%s2001_s13 + $0x8] sm:$0xff] }
  0x8d   : > { %422 = vmatmul.f32.gmra.mxu0 %v322_v24  ;;  %470 = vmatmul.f32.gmra.mxu1 %v338_v25 }
  0x8f   : > { %566 = vmatmul.f32.gmra.mxu3 %v370_v26  ;;  %518 = vmatmul.f32.gmra.mxu2 %v354_v27 }
  0x95   : > { %473 = vmatmul.f32.gmra.mxu1 %v339_v28  ;;  %425 = vmatmul.f32.gmra.mxu0 %v323_v29  ;;  %v659_v28 = vld [vmem:[%s2001_s13 + $0x190] sm:$0xff] }
  0x96   : > { %v611_v29 = vld [vmem:[%s2001_s13 + $0x10] sm:$0xff] }
  0x97   : > { %521 = vmatmul.f32.gmra.mxu2 %v355_v30  ;;  %569 = vmatmul.f32.gmra.mxu3 %v371_v31  ;;  %v378_v30 = vld [vmem:[%s2014_s27 + $0x1d0] sm:$0xff] }
  0x9d   : > { %428 = vmatmul.f32.gmra.mxu0 %v324_v32  ;;  %476 = vmatmul.f32.gmra.mxu1 %v340_v33  ;;  %v882_v32 = vld [vmem:[%s2008_s21 + $0x88] sm:$0xff] }
  0x9f   : > { %572 = vmatmul.f32.gmra.mxu3 %v372_v34  ;;  %524 = vmatmul.f32.gmra.mxu2 %v356_v35 }
  0xa5   : > { %431 = vmatmul.f32.gmra.mxu0 %v325_v36  ;;  %479 = vmatmul.f32.gmra.mxu1 %v341_v37  ;;  %v899_v36 = vld [vmem:[%s2008_s21 + $0x110] sm:$0xff] }
  0xa7   : > { %575 = vmatmul.f32.gmra.mxu3 %v373_v38  ;;  %527 = vmatmul.f32.gmra.mxu2 %v357_v39  ;;  %v883_v38 = vld [vmem:[%s2008_s21 + $0x90] sm:$0xff] }
  0xa8   : > { %v362_v39 = vld [vmem:[%s2014_s27 + $0x150] sm:$0xff] }
  0xad   : > { %434 = vmatmul.f32.gmra.mxu0 %v326_v40  ;;  %482 = vmatmul.f32.gmra.mxu1 %v342_v41  ;;  %v331_v40 = vld [vmem:[%s2014_s27 + $0x58] sm:$0xff] }
  0xaf   : > { %530 = vmatmul.f32.gmra.mxu2 %v358_v42  ;;  %578 = vmatmul.f32.gmra.mxu3 %v374_v43  ;;  %v642_v42 = vld [vmem:[%s2001_s13 + $0x108] sm:$0xff] }
  0xb5   : > { %485 = vmatmul.f32.gmra.mxu1 %v343_v44  ;;  %437 = vmatmul.f32.gmra.mxu0 %v327_v45 }
  0xb7   : > { %581 = vmatmul.f32.gmra.mxu3 %v375_v46  ;;  %533 = vmatmul.f32.gmra.mxu2 %v359_v47  ;;  %v884_v46 = vld [vmem:[%s2008_s21 + $0x98] sm:$0xff] }
  0xb8   : > { %v379_v47 = vld [vmem:[%s2014_s27 + $0x1d8] sm:$0xff] }
  0xbd   : > { %440 = vmatmul.f32.gmra.mxu0 %v328_v48  ;;  %488 = vmatmul.f32.gmra.mxu1 %v344_v50  ;;  %v347_v48 = vld [vmem:[%s2014_s27 + $0xd8] sm:$0xff] }
  0xbf   : > { %584 = vmatmul.f32.gmra.mxu3 %v376_v49  ;;  %536 = vmatmul.f32.gmra.mxu2 %v360_v51  ;;  %v643_v49 = vld [vmem:[%s2001_s13 + $0x110] sm:$0xff] }
  0xc0   : > { %v627_v51 = vld [vmem:[%s2001_s13 + $0x90] sm:$0xff] }
  0xc5   : > { %443 = vmatmul.f32.gmra.mxu0 %v329_v61  ;;  %491 = vmatmul.f32.gmra.mxu1 %v345_v62 }
  0xc7   : > { %539 = vmatmul.f32.gmra.mxu2 %v361_v8  ;;  %587 = vmatmul.f32.gmra.mxu3 %v377_v9 }
  0xcd   : > { %446 = vmatmul.f32.gmra.mxu0 %v330_v20  ;;  %494 = vmatmul.f32.gmra.mxu1 %v346_v21  ;;  %v661_v21 = vld [vmem:[%s2001_s13 + $0x1a0] sm:$0xff] }
  0xcf   : > { %590 = vmatmul.f32.gmra.mxu3 %v378_v30  ;;  %542 = vmatmul.f32.gmra.mxu2 %v362_v39 }
  0xd5   : > { %449 = vmatmul.f32.gmra.mxu0 %v331_v40  ;;  %497 = vmatmul.f32.gmra.mxu1 %v347_v48  ;;  %v350_v48 = vld [vmem:[%s2014_s27 + $0xf0] sm:$0xff] }
  0xd7   : > { %593 = vmatmul.f32.gmra.mxu3 %v379_v47  ;;  %v334_v47 = vld [vmem:[%s2014_s27 + $0x70] sm:$0xff] }
  0xfa   : > { %v417_v55 = vpop.f32.mrf.mxu0  ;;  %v465_v56 = vpop.f32.mrf.mxu1 }
  0xfb   : > { %v945_v57 = vmul.f32 %v881_v52, %v465_v56  ;;  %v689_v58 = vmul.f32 %v625_v53, %v465_v56  ;;  %v673_v59 = vmul.f32 %v609_v54, %v417_v55  ;;  %v929_v1 = vmul.f32 %v865_v60, %v417_v55  ;;  %v644_v56 = vld [vmem:[%s2001_s13 + $0x118] sm:$0xff]  ;;  %v867_v60 = vld [vmem:[%s2008_s21 + $0x10] sm:$0xff] }
  0xfd   : > { %1025 = vadd.xlane.f32.xlu2 %v945_v57  ;;  %769 = vadd.xlane.f32.xlu1 %v689_v58  ;;  %v612_v57 = vld [vmem:[%s2001_s13 + $0x18] sm:$0xff] }
  0xfe   : > { %737 = vadd.xlane.f32.xlu0 %v673_v59  ;;  %v363_v58 = vld [vmem:[%s2014_s27 + $0x158] sm:$0xff] }
  0xff   : > { %545 = vmatmul.f32.gmra.mxu2 %v363_v58 }
 0x102   : > { %v513_v2 = vpop.f32.mrf.mxu2  ;;  %v2064_v3 = vpop.f32.mrf.mxu3 }
 0x103   : > { %v705_v4 = vmul.f32 %v641_v63, %v513_v2  ;;  %v721_v5 = vmul.f32 %v657_v0, %v2064_v3  ;;  %v468_v6 = vpop.f32.mrf.mxu1  ;;  %v961_v15 = vmul.f32 %v897_v12, %v513_v2  ;;  %v420_v16 = vpop.f32.mrf.mxu0  ;;  %v613_v0 = vld [vmem:[%s2001_s13 + $0x20] sm:$0xff] }
 0x104   : > { %v690_v11 = vmul.f32 %v626_v7, %v468_v6  ;;  %v930_v24 = vmul.f32 %v866_v19, %v420_v16  ;;  %v674_v25 = vmul.f32 %v610_v22, %v420_v16  ;;  %v946_v34 = vmul.f32 %v882_v32, %v468_v6  ;;  %v348_v2 = vld [vmem:[%s2014_s27 + $0xe0] sm:$0xff]  ;;  %v628_v6 = vld [vmem:[%s2001_s13 + $0x98] sm:$0xff]  ;;  %v333_v22 = vld [vmem:[%s2014_s27 + $0x68] sm:$0xff] }
 0x105   : > { %801 = vadd.xlane.f32.xlu2 %v705_v4  ;;  %993 = vadd.xlane.f32.xlu1 %v929_v1  ;;  %v332_v1 = vld [vmem:[%s2014_s27 + $0x60] sm:$0xff]  ;;  %v900_v16 = vld [vmem:[%s2008_s21 + $0x118] sm:$0xff] }
 0x106   : > { %833 = vadd.xlane.f32.xlu0 %v721_v5  ;;  %v660_v5 = vld [vmem:[%s2001_s13 + $0x198] sm:$0xff]  ;;  %452 = vmatmul.f32.gmra.mxu0 %v332_v1  ;;  %v364_v12 = vld [vmem:[%s2014_s27 + $0x160] sm:$0xff] }
 0x107   : > { %500 = vmatmul.f32.gmra.mxu1 %v348_v2  ;;  %548 = vmatmul.f32.gmra.mxu2 %v364_v12  ;;  %v901_v32 = vld [vmem:[%s2008_s21 + $0x120] sm:$0xff]  ;;  %v351_v2 = vld [vmem:[%s2014_s27 + $0xf8] sm:$0xff] }
 0x10a   : > { %v2072_v13 = vpop.f32.mrf.mxu3  ;;  %v516_v18 = vpop.f32.mrf.mxu2 }
 0x10b   : > { %v722_v14 = vmul.f32 %v658_v10, %v2072_v13  ;;  %v962_v23 = vmul.f32 %v898_v17, %v516_v18  ;;  %v423_v26 = vpop.f32.mrf.mxu0  ;;  %v471_v35 = vpop.f32.mrf.mxu1  ;;  %v706_v44 = vmul.f32 %v642_v42, %v516_v18  ;;  %v662_v42 = vld [vmem:[%s2001_s13 + $0x1a8] sm:$0xff] }
 0x10c   : > { %v675_v33 = vmul.f32 %v611_v29, %v423_v26  ;;  %v947_v43 = vmul.f32 %v883_v38, %v471_v35  ;;  %v691_v53 = vmul.f32 %v627_v51, %v471_v35  ;;  %v931_v62 = vmul.f32 %v867_v60, %v423_v26  ;;  %v645_v35 = vld [vmem:[%s2001_s13 + $0x120] sm:$0xff]  ;;  %v631_v60 = vld [vmem:[%s2001_s13 + $0xb0] sm:$0xff] }
 0x10d   : > { %771 = vadd.xlane.f32.xlu2 %v690_v11  ;;  %835 = vadd.xlane.f32.xlu1 %v722_v14  ;;  %v629_v11 = vld [vmem:[%s2001_s13 + $0xa0] sm:$0xff] }
 0x10e   : > { %1057 = vadd.xlane.f32.xlu0 %v961_v15  ;;  %v380_v14 = vld [vmem:[%s2014_s27 + $0x1e0] sm:$0xff]  ;;  %v868_v15 = vld [vmem:[%s2008_s21 + $0x18] sm:$0xff]  ;;  %455 = vmatmul.f32.gmra.mxu0 %v333_v22 }
 0x10f   : > { %596 = vmatmul.f32.gmra.mxu3 %v380_v14 }
 0x112   : > { %v2080_v27 = vpop.f32.mrf.mxu3  ;;  %v519_v37 = vpop.f32.mrf.mxu2 }
 0x113   : > { %v723_v31 = vmul.f32 %v659_v28, %v2080_v27  ;;  %v963_v41 = vmul.f32 %v899_v36, %v519_v37  ;;  %v474_v45 = vpop.f32.mrf.mxu1  ;;  %v707_v52 = vmul.f32 %v643_v49, %v519_v37  ;;  %v426_v54 = vpop.f32.mrf.mxu0 }
 0x114   : > { %v948_v50 = vmul.f32 %v884_v46, %v474_v45  ;;  %v676_v61 = vmul.f32 %v612_v57, %v426_v54  ;;  %v692_v9 = vmul.f32 %v628_v6, %v474_v45  ;;  %v932_v18 = vmul.f32 %v868_v15, %v426_v54  ;;  %v382_v54 = vld [vmem:[%s2014_s27 + $0x1f0] sm:$0xff] }
 0x115   : > { %1059 = vadd.xlane.f32.xlu1 %v962_v23  ;;  %995 = vadd.xlane.f32.xlu2 %v930_v24  ;;  %v349_v23 = vld [vmem:[%s2014_s27 + $0xe8] sm:$0xff]  ;;  %v869_v24 = vld [vmem:[%s2008_s21 + $0x20] sm:$0xff] }
 0x116   : > { %739 = vadd.xlane.f32.xlu0 %v674_v25  ;;  %503 = vmatmul.f32.gmra.mxu1 %v349_v23  ;;  %v885_v25 = vld [vmem:[%s2008_s21 + $0xa0] sm:$0xff] }
 0x117   : > { %458 = vmatmul.f32.gmra.mxu0 %v334_v47 }
 0x11a   : > { %v522_v55 = vpop.f32.mrf.mxu2  ;;  %v2104_v4 = vpop.f32.mrf.mxu3 }
 0x11b   : > { %v708_v59 = vmul.f32 %v644_v56, %v522_v55  ;;  %v429_v63 = vpop.f32.mrf.mxu0  ;;  %v724_v8 = vmul.f32 %v660_v5, %v2104_v4  ;;  %v477_v10 = vpop.f32.mrf.mxu1  ;;  %v964_v19 = vmul.f32 %v900_v16, %v522_v55  ;;  %v870_v56 = vld [vmem:[%s2008_s21 + $0x28] sm:$0xff] }
 0x11c   : > { %v677_v7 = vmul.f32 %v613_v0, %v429_v63  ;;  %v693_v17 = vmul.f32 %v629_v11, %v477_v10  ;;  %v933_v28 = vmul.f32 %v869_v24, %v429_v63  ;;  %v949_v29 = vmul.f32 %v885_v25, %v477_v10  ;;  %v615_v63 = vld [vmem:[%s2001_s13 + $0x30] sm:$0xff]  ;;  %v616_v24 = vld [vmem:[%s2001_s13 + $0x38] sm:$0xff] }
 0x11d   : > { %837 = vadd.xlane.f32.xlu2 %v723_v31  ;;  %741 = vadd.xlane.f32.xlu1 %v675_v33  ;;  %v614_v33 = vld [vmem:[%s2001_s13 + $0x28] sm:$0xff]  ;;  %v663_v10 = vld [vmem:[%s2001_s13 + $0x1b0] sm:$0xff]  ;;  %v367_v25 = vld [vmem:[%s2014_s27 + $0x178] sm:$0xff] }
 0x11e   : > { %1027 = vadd.xlane.f32.xlu0 %v946_v34  ;;  %v381_v34 = vld [vmem:[%s2014_s27 + $0x1e8] sm:$0xff]  ;;  %506 = vmatmul.f32.gmra.mxu1 %v350_v48 }
 0x11f   : > { %599 = vmatmul.f32.gmra.mxu3 %v381_v34 }
 0x122   : > { %v2114_v20 = vpop.f32.mrf.mxu3  ;;  %v525_v31 = vpop.f32.mrf.mxu2 }
 0x123   : > { %v725_v26 = vmul.f32 %v661_v21, %v2114_v20  ;;  %v432_v30 = vpop.f32.mrf.mxu0  ;;  %v965_v36 = vmul.f32 %v901_v32, %v525_v31  ;;  %v709_v38 = vmul.f32 %v645_v35, %v525_v31  ;;  %v480_v39 = vpop.f32.mrf.mxu1  ;;  %v632_v21 = vld [vmem:[%s2001_s13 + $0xb8] sm:$0xff]  ;;  %v903_v32 = vld [vmem:[%s2008_s21 + $0x130] sm:$0xff] }
 0x124   : > { %v678_v37 = vmul.f32 %v614_v33, %v432_v30  ;;  %v934_v58 = vmul.f32 %v870_v56, %v432_v30 }
 0x125   : > { %1061 = vadd.xlane.f32.xlu2 %v963_v41  ;;  %1029 = vadd.xlane.f32.xlu1 %v947_v43  ;;  %v886_v41 = vld [vmem:[%s2008_s21 + $0xa8] sm:$0xff] }
 0x126   : > { %803 = vadd.xlane.f32.xlu0 %v706_v44  ;;  %v365_v43 = vld [vmem:[%s2014_s27 + $0x168] sm:$0xff]  ;;  %v950_v45 = vmul.f32 %v886_v41, %v480_v39  ;;  %509 = vmatmul.f32.gmra.mxu1 %v351_v2 }
 0x127   : > { %v630_v44 = vld [vmem:[%s2001_s13 + $0xa8] sm:$0xff]  ;;  %551 = vmatmul.f32.gmra.mxu2 %v365_v43  ;;  %602 = vmatmul.f32.gmra.mxu3 %v382_v54  ;;  %v888_v43 = vld [vmem:[%s2008_s21 + $0xb8] sm:$0xff] }
 0x128   : > { %v694_v49 = vmul.f32 %v630_v44, %v480_v39 }
 0x12a   : > { %v2126_v40 = vpop.f32.mrf.mxu3  ;;  %v528_v51 = vpop.f32.mrf.mxu2 }
 0x12b   : > { %v726_v46 = vmul.f32 %v662_v42, %v2126_v40 }
 0x12d   : > { %1031 = vadd.xlane.f32.xlu2 %v948_v50  ;;  %805 = vadd.xlane.f32.xlu1 %v707_v52  ;;  %v646_v50 = vld [vmem:[%s2001_s13 + $0x128] sm:$0xff] }
 0x12e   : > { %773 = vadd.xlane.f32.xlu0 %v691_v53  ;;  %v902_v52 = vld [vmem:[%s2008_s21 + $0x128] sm:$0xff]  ;;  %v366_v53 = vld [vmem:[%s2014_s27 + $0x170] sm:$0xff]  ;;  %v710_v55 = vmul.f32 %v646_v50, %v528_v51  ;;  %v904_v50 = vld [vmem:[%s2008_s21 + $0x138] sm:$0xff] }
 0x12f   : > { %554 = vmatmul.f32.gmra.mxu2 %v366_v53  ;;  %v966_v57 = vmul.f32 %v902_v52, %v528_v51  ;;  %v617_v51 = vld [vmem:[%s2001_s13 + $0x40] sm:$0xff]  ;;  %v648_v52 = vld [vmem:[%s2001_s13 + $0x138] sm:$0xff] }
 0x132   : > { %v531_v6 = vpop.f32.mrf.mxu2 }
 0x133   : > { %v967_v35 = vmul.f32 %v903_v32, %v531_v6 }
 0x135   : > { %807 = vadd.xlane.f32.xlu2 %v708_v59  ;;  %743 = vadd.xlane.f32.xlu1 %v676_v61  ;;  %v483_v59 = vpop.f32.mrf.mxu1  ;;  %v887_v61 = vld [vmem:[%s2008_s21 + $0xb0] sm:$0xff] }
 0x136   : > { %997 = vadd.xlane.f32.xlu0 %v931_v62  ;;  %v435_v62 = vpop.f32.mrf.mxu0  ;;  %v695_v0 = vmul.f32 %v631_v60, %v483_v59  ;;  %v951_v1 = vmul.f32 %v887_v61, %v483_v59 }
 0x137   : > { %v679_v5 = vmul.f32 %v615_v63, %v435_v62  ;;  %557 = vmatmul.f32.gmra.mxu2 %v367_v25  ;;  %v665_v63 = vld [vmem:[%s2001_s13 + $0x1c0] sm:$0xff] }
 0x13d   : > { %775 = vadd.xlane.f32.xlu1 %v692_v9  ;;  %745 = vadd.xlane.f32.xlu2 %v677_v7  ;;  %v647_v7 = vld [vmem:[%s2001_s13 + $0x130] sm:$0xff]  ;;  %v2146_v9 = vpop.f32.mrf.mxu3  ;;  %v486_v23 = vpop.f32.mrf.mxu1 }
 0x13e   : > { %839 = vadd.xlane.f32.xlu0 %v724_v8  ;;  %v871_v8 = vld [vmem:[%s2008_s21 + $0x30] sm:$0xff]  ;;  %v711_v15 = vmul.f32 %v647_v7, %v531_v6  ;;  %v438_v22 = vpop.f32.mrf.mxu0  ;;  %v696_v31 = vmul.f32 %v632_v21, %v486_v23  ;;  %v952_v47 = vmul.f32 %v888_v43, %v486_v23  ;;  %v873_v21 = vld [vmem:[%s2008_s21 + $0x40] sm:$0xff] }
 0x13f   : > { %v935_v16 = vmul.f32 %v871_v8, %v435_v62  ;;  %v680_v33 = vmul.f32 %v616_v24, %v438_v22  ;;  %v889_v62 = vld [vmem:[%s2008_s21 + $0xc0] sm:$0xff] }
 0x145   : > { %999 = vadd.xlane.f32.xlu1 %v932_v18  ;;  %777 = vadd.xlane.f32.xlu2 %v693_v17  ;;  %v335_v17 = vld [vmem:[%s2014_s27 + $0x78] sm:$0xff]  ;;  %v489_v60 = vpop.f32.mrf.mxu1 }
 0x146   : > { %1063 = vadd.xlane.f32.xlu0 %v964_v19  ;;  %v727_v19 = vmul.f32 %v663_v10, %v2146_v9  ;;  %461 = vmatmul.f32.gmra.mxu0 %v335_v17  ;;  %v441_v48 = vpop.f32.mrf.mxu0  ;;  %v953_v6 = vmul.f32 %v889_v62, %v489_v60  ;;  %v619_v62 = vld [vmem:[%s2001_s13 + $0x50] sm:$0xff] }
 0x147   : > { %v937_v24 = vmul.f32 %v873_v21, %v441_v48  ;;  %v891_v21 = vld [vmem:[%s2008_s21 + $0xd0] sm:$0xff] }
 0x14d   : > { %841 = vadd.xlane.f32.xlu1 %v725_v26  ;;  %1001 = vadd.xlane.f32.xlu2 %v933_v28  ;;  %v383_v26 = vld [vmem:[%s2014_s27 + $0x1f8] sm:$0xff]  ;;  %v492_v25 = vpop.f32.mrf.mxu1 }
 0x14e   : > { %1033 = vadd.xlane.f32.xlu0 %v949_v29  ;;  %605 = vmatmul.f32.gmra.mxu3 %v383_v26  ;;  %v634_v26 = vld [vmem:[%s2001_s13 + $0xc8] sm:$0xff] }
 0x155   : > { %1065 = vadd.xlane.f32.xlu1 %v965_v36  ;;  %747 = vadd.xlane.f32.xlu2 %v678_v37  ;;  %v2164_v36 = vpop.f32.mrf.mxu3  ;;  %v872_v37 = vld [vmem:[%s2008_s21 + $0x38] sm:$0xff] }
 0x156   : > { %809 = vadd.xlane.f32.xlu0 %v709_v38  ;;  %v664_v38 = vld [vmem:[%s2001_s13 + $0x1b8] sm:$0xff]  ;;  %v936_v44 = vmul.f32 %v872_v37, %v438_v22  ;;  %v698_v37 = vmul.f32 %v634_v26, %v492_v25 }
 0x15d   : > { %1035 = vadd.xlane.f32.xlu1 %v950_v45  ;;  %843 = vadd.xlane.f32.xlu2 %v726_v46  ;;  %v728_v45 = vmul.f32 %v664_v38, %v2164_v36  ;;  %v2181_v61 = vpop.f32.mrf.mxu3 }
 0x15e   : > { %779 = vadd.xlane.f32.xlu0 %v694_v49  ;;  %v534_v49 = vpop.f32.mrf.mxu2  ;;  %v729_v7 = vmul.f32 %v665_v63, %v2181_v61 }
 0x15f   : > { %v968_v56 = vmul.f32 %v904_v50, %v534_v49 }
 0x165   : > { %811 = vadd.xlane.f32.xlu1 %v710_v55  ;;  %1067 = vadd.xlane.f32.xlu2 %v966_v57  ;;  %v681_v57 = vmul.f32 %v617_v51, %v441_v48  ;;  %v2209_v48 = vpop.f32.mrf.mxu3 }
 0x166   : > { %1003 = vadd.xlane.f32.xlu0 %v934_v58  ;;  %v712_v58 = vmul.f32 %v648_v52, %v534_v49  ;;  %v666_v49 = vld [vmem:[%s2001_s13 + $0x1c8] sm:$0xff] }
 0x16d   : > { %781 = vadd.xlane.f32.xlu1 %v695_v0  ;;  %1037 = vadd.xlane.f32.xlu2 %v951_v1  ;;  %v633_v0 = vld [vmem:[%s2001_s13 + $0xc0] sm:$0xff] }
 0x16e   : > { %749 = vadd.xlane.f32.xlu0 %v679_v5  ;;  %v697_v8 = vmul.f32 %v633_v0, %v489_v60  ;;  %v635_v60 = vld [vmem:[%s2001_s13 + $0xd0] sm:$0xff] }
 0x170   : > { %v1026_v11 = vpop.xlane.xlu2 %1025  ;;  %v770_v12 = vpop.xlane.xlu1 %769 }
 0x171   : > { %v738_v14 = vpop.xlane.xlu0 %737  ;;  %v2151_v18 = vsel %vm1121_vm0, %v770_v12, %v1026_v11  ;;  %v537_v11 = vpop.f32.mrf.mxu2  ;;  %v649_v12 = vld [vmem:[%s2001_s13 + $0x140] sm:$0xff] }
 0x175   : > { %813 = vadd.xlane.f32.xlu2 %v711_v15  ;;  %1005 = vadd.xlane.f32.xlu1 %v935_v16 }
 0x176   : > { %845 = vadd.xlane.f32.xlu0 %v727_v19  ;;  %v713_v19 = vmul.f32 %v649_v12, %v537_v11  ;;  %v2224_v12 = vpop.f32.mrf.mxu3 }
 0x178   : > { %v802_v28 = vpop.xlane.xlu2 %801  ;;  %v994_v29 = vpop.xlane.xlu1 %993 }
 0x179   : > { %v2158_v30 = vpop.xlane.xlu0 %833  ;;  %v2162_v34 = vsel %vm1121_vm0, %v738_v14, %v994_v29  ;;  %v905_v14 = vld [vmem:[%s2008_s21 + $0x140] sm:$0xff]  ;;  %v444_v29 = vpop.f32.mrf.mxu0 }
 0x17a   : > { %v969_v22 = vmul.f32 %v905_v14, %v537_v11  ;;  %v875_v14 = vld [vmem:[%s2008_s21 + $0x50] sm:$0xff] }
 0x17d   : > { %783 = vadd.xlane.f32.xlu2 %v696_v31  ;;  %751 = vadd.xlane.f32.xlu1 %v680_v33  ;;  %v618_v31 = vld [vmem:[%s2001_s13 + $0x48] sm:$0xff] }
 0x17e   : > { %1069 = vadd.xlane.f32.xlu0 %v967_v35 }
 0x180   : > { %v772_v39 = vpop.xlane.xlu2 %771  ;;  %v2168_v41 = vpop.xlane.xlu1 %835 }
 0x181   : > { %v1058_v42 = vpop.xlane.xlu0 %1057 }
 0x182   : > { %v2173_v46 = vsel %vm1121_vm0, %v802_v28, %v1058_v42  ;;  %v890_v28 = vld [vmem:[%s2008_s21 + $0xc8] sm:$0xff]  ;;  %v682_v42 = vmul.f32 %v618_v31, %v444_v29 }
 0x183   : > { %v954_v38 = vmul.f32 %v890_v28, %v492_v25 }
 0x185   : > { %1007 = vadd.xlane.f32.xlu2 %v936_v44  ;;  %847 = vadd.xlane.f32.xlu1 %v728_v45  ;;  %v540_v44 = vpop.f32.mrf.mxu2  ;;  %v650_v45 = vld [vmem:[%s2001_s13 + $0x148] sm:$0xff] }
 0x186   : > { %1039 = vadd.xlane.f32.xlu0 %v952_v47  ;;  %v874_v47 = vld [vmem:[%s2008_s21 + $0x48] sm:$0xff] }
 0x188   : > { %v1060_v53 = vpop.xlane.xlu1 %1059  ;;  %v996_v54 = vpop.xlane.xlu2 %995 }
 0x189   : > { %v740_v55 = vpop.xlane.xlu0 %739 }
 0x18a   : > { %v2179_v59 = vsel %vm1121_vm0, %v740_v55, %v996_v54  ;;  %v938_v54 = vmul.f32 %v874_v47, %v444_v29  ;;  %v730_v55 = vmul.f32 %v666_v49, %v2209_v48 }
 0x18d   : > { %1071 = vadd.xlane.f32.xlu1 %v968_v56  ;;  %753 = vadd.xlane.f32.xlu2 %v681_v57  ;;  %v447_v57 = vpop.f32.mrf.mxu0  ;;  %v543_v31 = vpop.f32.mrf.mxu2 }
 0x18e   : > { %815 = vadd.xlane.f32.xlu0 %v712_v58  ;;  %v495_v58 = vpop.f32.mrf.mxu1 }
 0x18f   : > { %v955_v28 = vmul.f32 %v891_v21, %v495_v58 }
 0x190   : > { %v2186_v1 = vpop.xlane.xlu2 %837  ;;  %v742_v2 = vpop.xlane.xlu1 %741 }
 0x191   : > { %v1028_v5 = vpop.xlane.xlu0 %1027 }
 0x192   : > { %v2190_v10 = vsel %vm1121_vm0, %v772_v39, %v1028_v5 }
 0x195   : > { %1041 = vadd.xlane.f32.xlu1 %v953_v6  ;;  %849 = vadd.xlane.f32.xlu2 %v729_v7  ;;  %v699_v6 = vmul.f32 %v635_v60, %v495_v58  ;;  %v906_v7 = vld [vmem:[%s2008_s21 + $0x148] sm:$0xff]  ;;  %v450_v29 = vpop.f32.mrf.mxu0 }
 0x196   : > { %785 = vadd.xlane.f32.xlu0 %v697_v8  ;;  %v683_v8 = vmul.f32 %v619_v62, %v447_v57  ;;  %v970_v11 = vmul.f32 %v906_v7, %v540_v44  ;;  %v546_v7 = vpop.f32.mrf.mxu2 }
 0x198   : > { %v1062_v15 = vpop.xlane.xlu2 %1061  ;;  %v1030_v16 = vpop.xlane.xlu1 %1029 }
 0x199   : > { %v804_v17 = vpop.xlane.xlu0 %803 }
 0x19a   : > { %v2196_v23 = vsel %vm1121_vm0, %v804_v17, %v1060_v53  ;;  %v714_v53 = vmul.f32 %v650_v45, %v540_v44 }
 0x19d   : > { %817 = vadd.xlane.f32.xlu1 %v713_v19  ;;  %1073 = vadd.xlane.f32.xlu2 %v969_v22  ;;  %v939_v22 = vmul.f32 %v875_v14, %v447_v57 }
 0x19e   : > { %1009 = vadd.xlane.f32.xlu0 %v937_v24 }
 0x1a0   : > { %v1032_v32 = vpop.xlane.xlu2 %1031  ;;  %v806_v33 = vpop.xlane.xlu1 %805 }
 0x1a1   : > { %v774_v35 = vpop.xlane.xlu0 %773  ;;  %v2202_v39 = vsel %vm1121_vm0, %v806_v33, %v1062_v15  ;;  %v667_v15 = vld [vmem:[%s2001_s13 + $0x1d0] sm:$0xff]  ;;  %v620_v33 = vld [vmem:[%s2001_s13 + $0x58] sm:$0xff] }
 0x1a2   : > { %v2205_v43 = vsel %vm1121_vm0, %v774_v35, %v1030_v16  ;;  %v731_v24 = vmul.f32 %v667_v15, %v2224_v12  ;;  %v651_v35 = vld [vmem:[%s2001_s13 + $0x150] sm:$0xff]  ;;  %v684_v45 = vmul.f32 %v620_v33, %v450_v29  ;;  %v453_v33 = vpop.f32.mrf.mxu0 }
 0x1a3   : > { %v715_v49 = vmul.f32 %v651_v35, %v543_v31  ;;  %v621_v35 = vld [vmem:[%s2001_s13 + $0x60] sm:$0xff] }
 0x1a5   : > { %787 = vadd.xlane.f32.xlu1 %v698_v37  ;;  %1043 = vadd.xlane.f32.xlu2 %v954_v38 }
 0x1a6   : > { %755 = vadd.xlane.f32.xlu0 %v682_v42 }
 0x1a8   : > { %v808_v50 = vpop.xlane.xlu2 %807  ;;  %v744_v51 = vpop.xlane.xlu1 %743 }
 0x1a9   : > { %v998_v52 = vpop.xlane.xlu0 %997 }
 0x1aa   : > { %v2214_v56 = vsel %vm1121_vm0, %v742_v2, %v998_v52  ;;  %v2247_v52 = vpop.f32.mrf.mxu3 }
 0x1ad   : > { %819 = vadd.xlane.f32.xlu2 %v714_v53  ;;  %1011 = vadd.xlane.f32.xlu1 %v938_v54  ;;  %v892_v53 = vld [vmem:[%s2008_s21 + $0xd8] sm:$0xff] }
 0x1ae   : > { %851 = vadd.xlane.f32.xlu0 %v730_v55  ;;  %v668_v54 = vld [vmem:[%s2001_s13 + $0x1d8] sm:$0xff] }
 0x1af   : > { %v636_v55 = vld [vmem:[%s2001_s13 + $0xd8] sm:$0xff] }
 0x1b0   : > { %v776_v63 = vpop.xlane.xlu1 %775  ;;  %v746_v0 = vpop.xlane.xlu2 %745 }
 0x1b1   : > { %v2218_v5 = vpop.xlane.xlu0 %839  ;;  %v2222_v2 = vsel %vm1121_vm0, %v776_v63, %v1032_v32  ;;  %v907_v32 = vld [vmem:[%s2008_s21 + $0x150] sm:$0xff]  ;;  %v732_v63 = vmul.f32 %v668_v54, %v2247_v52  ;;  %v549_v54 = vpop.f32.mrf.mxu2 }
 0x1b2   : > { %2551 = vst [vmem:[#allocation17_spill] sm:$0xff] %v2218_v5  ;;  %v971_v44 = vmul.f32 %v907_v32, %v543_v31  ;;  %v637_v31 = vld [vmem:[%s2001_s13 + $0xe0] sm:$0xff] }
 0x1b3   : > { %v893_v32 = vld [vmem:[%s2008_s21 + $0xe0] sm:$0xff] }
 0x1b5   : > { %789 = vadd.xlane.f32.xlu2 %v699_v6  ;;  %757 = vadd.xlane.f32.xlu1 %v683_v8  ;;  %v652_v8 = vld [vmem:[%s2001_s13 + $0x158] sm:$0xff] }
 0x1b6   : > { %1075 = vadd.xlane.f32.xlu0 %v970_v11  ;;  %v908_v11 = vld [vmem:[%s2008_s21 + $0x158] sm:$0xff] }
 0x1b7   : > { %v972_v21 = vmul.f32 %v908_v11, %v546_v7 }
 0x1b8   : > { %v1000_v16 = vpop.xlane.xlu1 %999  ;;  %v778_v17 = vpop.xlane.xlu2 %777 }
 0x1b9   : > { %v1064_v19 = vpop.xlane.xlu0 %1063  ;;  %v2231_v25 = vsel %vm1121_vm0, %v744_v51, %v1000_v16  ;;  %v498_v51 = vpop.f32.mrf.mxu1 }
 0x1ba   : > { %v2234_v26 = vsel %vm1121_vm0, %v808_v50, %v1064_v19  ;;  %v956_v62 = vmul.f32 %v892_v53, %v498_v51  ;;  %v876_v19 = vld [vmem:[%s2008_s21 + $0x58] sm:$0xff] }
 0x1bd   : > { %1013 = vadd.xlane.f32.xlu2 %v939_v22  ;;  %853 = vadd.xlane.f32.xlu1 %v731_v24  ;;  %v940_v24 = vmul.f32 %v876_v19, %v450_v29  ;;  %v685_v29 = vmul.f32 %v621_v35, %v453_v33  ;;  %v638_v19 = vld [vmem:[%s2001_s13 + $0xe8] sm:$0xff] }
 0x1be   : > { %1045 = vadd.xlane.f32.xlu0 %v955_v28 }
 0x1c0   : > { %v2239_v37 = vpop.xlane.xlu1 %841  ;;  %v1002_v38 = vpop.xlane.xlu2 %1001 }
 0x1c1   : > { %2552 = vst [vmem:[#allocation18_spill] sm:$0xff] %v2239_v37  ;;  %v1034_v42 = vpop.xlane.xlu0 %1033  ;;  %v2242_v47 = vsel %vm1121_vm0, %v746_v0, %v1002_v38  ;;  %v700_v0 = vmul.f32 %v636_v55, %v498_v51  ;;  %v501_v28 = vpop.f32.mrf.mxu1  ;;  %v653_v55 = vld [vmem:[%s2001_s13 + $0x160] sm:$0xff] }
 0x1c2   : > { %v2245_v50 = vsel %vm1121_vm0, %v778_v17, %v1034_v42  ;;  %v716_v17 = vmul.f32 %v652_v8, %v546_v7  ;;  %v717_v8 = vmul.f32 %v653_v55, %v549_v54 }
 0x1c5   : > { %1077 = vadd.xlane.f32.xlu1 %v971_v44  ;;  %759 = vadd.xlane.f32.xlu2 %v684_v45  ;;  %v701_v45 = vmul.f32 %v637_v31, %v501_v28 }
 0x1c6   : > { %821 = vadd.xlane.f32.xlu0 %v715_v49  ;;  %v957_v49 = vmul.f32 %v893_v32, %v501_v28 }
 0x1c8   : > { %v1066_v57 = vpop.xlane.xlu1 %1065  ;;  %v748_v58 = vpop.xlane.xlu2 %747 }
 0x1c9   : > { %v810_v60 = vpop.xlane.xlu0 %809 }
 0x1ca   : > { %v2254_v6 = vsel %vm1121_vm0, %v810_v60, %v1066_v57  ;;  %v877_v57 = vld [vmem:[%s2008_s21 + $0x60] sm:$0xff]  ;;  %v2275_v60 = vpop.f32.mrf.mxu3 }
 0x1cb   : > { %v941_v11 = vmul.f32 %v877_v57, %v453_v33  ;;  %v909_v33 = vld [vmem:[%s2008_s21 + $0x160] sm:$0xff] }
 0x1cd   : > { %1047 = vadd.xlane.f32.xlu1 %v956_v62  ;;  %855 = vadd.xlane.f32.xlu2 %v732_v63  ;;  %v669_v62 = vld [vmem:[%s2001_s13 + $0x1e0] sm:$0xff] }
 0x1ce   : > { %791 = vadd.xlane.f32.xlu0 %v700_v0 }
 0x1d0   : > { %v1036_v14 = vpop.xlane.xlu1 %1035  ;;  %v2258_v15 = vpop.xlane.xlu2 %843 }
 0x1d1   : > { %2553 = vst [vmem:[#allocation19_spill] sm:$0xff] %v2258_v15  ;;  %v780_v16 = vpop.xlane.xlu0 %779  ;;  %v879_v15 = vld [vmem:[%s2008_s21 + $0x70] sm:$0xff] }
 0x1d2   : > { %v2262_v22 = vsel %vm1121_vm0, %v780_v16, %v1036_v14  ;;  %v733_v14 = vmul.f32 %v669_v62, %v2275_v60  ;;  %v456_v16 = vpop.f32.mrf.mxu0  ;;  %v894_v62 = vld [vmem:[%s2008_s21 + $0xe8] sm:$0xff] }
 0x1d5   : > { %823 = vadd.xlane.f32.xlu1 %v716_v17  ;;  %1079 = vadd.xlane.f32.xlu2 %v972_v21  ;;  %v504_v17 = vpop.f32.mrf.mxu1  ;;  %v622_v21 = vld [vmem:[%s2001_s13 + $0x68] sm:$0xff] }
 0x1d6   : > { %1015 = vadd.xlane.f32.xlu0 %v940_v24  ;;  %v702_v32 = vmul.f32 %v638_v19, %v504_v17  ;;  %v686_v35 = vmul.f32 %v622_v21, %v456_v16  ;;  %v895_v19 = vld [vmem:[%s2008_s21 + $0xf0] sm:$0xff] }
 0x1d7   : > { %v623_v21 = vld [vmem:[%s2001_s13 + $0x70] sm:$0xff] }
 0x1d8   : > { %v812_v38 = vpop.xlane.xlu1 %811  ;;  %v1068_v42 = vpop.xlane.xlu2 %1067 }
 0x1d9   : > { %v1004_v44 = vpop.xlane.xlu0 %1003  ;;  %v2268_v51 = vsel %vm1121_vm0, %v812_v38, %v1068_v42  ;;  %v973_v42 = vmul.f32 %v909_v33, %v549_v54  ;;  %v958_v54 = vmul.f32 %v894_v62, %v504_v17  ;;  %v655_v62 = vld [vmem:[%s2001_s13 + $0x170] sm:$0xff] }
 0x1da   : > { %v2271_v53 = vsel %vm1121_vm0, %v748_v58, %v1004_v44  ;;  %v2290_v44 = vpop.f32.mrf.mxu3 }
 0x1dd   : > { %793 = vadd.xlane.f32.xlu1 %v701_v45  ;;  %1049 = vadd.xlane.f32.xlu2 %v957_v49  ;;  %v878_v45 = vld [vmem:[%s2008_s21 + $0x68] sm:$0xff] }
 0x1de   : > { %761 = vadd.xlane.f32.xlu0 %v685_v29  ;;  %v670_v49 = vld [vmem:[%s2001_s13 + $0x1e8] sm:$0xff] }
 0x1e0   : > { %v782_v63 = vpop.xlane.xlu1 %781  ;;  %v1038_v0 = vpop.xlane.xlu2 %1037 }
 0x1e1   : > { %v750_v7 = vpop.xlane.xlu0 %749  ;;  %v2279_v58 = vsel %vm1121_vm0, %v782_v63, %v1038_v0  ;;  %v942_v63 = vmul.f32 %v878_v45, %v456_v16  ;;  %v734_v0 = vmul.f32 %v670_v49, %v2290_v44 }
 0x1e5   : > { %825 = vadd.xlane.f32.xlu2 %v717_v8  ;;  %1017 = vadd.xlane.f32.xlu1 %v941_v11  ;;  %v2299_v8 = vpop.f32.mrf.mxu2  ;;  %v459_v11 = vpop.f32.mrf.mxu0 }
 0x1e6   : > { %857 = vadd.xlane.f32.xlu0 %v733_v14  ;;  %v507_v14 = vpop.f32.mrf.mxu1 }
 0x1e8   : > { %v814_v24 = vpop.xlane.xlu2 %813  ;;  %v1006_v28 = vpop.xlane.xlu1 %1005 }
 0x1e9   : > { %v2284_v31 = vpop.xlane.xlu0 %845  ;;  %v2288_v38 = vsel %vm1121_vm0, %v750_v7, %v1006_v28  ;;  %v654_v28 = vld [vmem:[%s2001_s13 + $0x168] sm:$0xff] }
 0x1ea   : > { %2554 = vst [vmem:[#allocation20_spill] sm:$0xff] %v2284_v31 }
 0x1ed   : > { %795 = vadd.xlane.f32.xlu2 %v702_v32  ;;  %763 = vadd.xlane.f32.xlu1 %v686_v35  ;;  %v687_v35 = vmul.f32 %v623_v21, %v459_v11  ;;  %v555_v49 = vpop.f32.mrf.mxu2 }
 0x1ee   : > { %1081 = vadd.xlane.f32.xlu0 %v973_v42  ;;  %v718_v42 = vmul.f32 %v654_v28, %v2299_v8  ;;  %v719_v21 = vmul.f32 %v655_v62, %v555_v49 }
 0x1f0   : > { %v784_v29 = vpop.xlane.xlu2 %783  ;;  %v752_v55 = vpop.xlane.xlu1 %751 }
 0x1f1   : > { %v1070_v57 = vpop.xlane.xlu0 %1069 }
 0x1f2   : > { %v2297_v7 = vsel %vm1121_vm0, %v814_v24, %v1070_v57  ;;  %v959_v24 = vmul.f32 %v895_v19, %v507_v14  ;;  %v2313_v57 = vpop.f32.mrf.mxu3 }
 0x1f5   : > { %1019 = vadd.xlane.f32.xlu2 %v942_v63  ;;  %859 = vadd.xlane.f32.xlu1 %v734_v0  ;;  %v671_v63 = vld [vmem:[%s2001_s13 + $0x1f0] sm:$0xff] }
 0x1f6   : > { %1051 = vadd.xlane.f32.xlu0 %v958_v54  ;;  %v639_v0 = vld [vmem:[%s2001_s13 + $0xf0] sm:$0xff]  ;;  %v735_v28 = vmul.f32 %v671_v63, %v2313_v57 }
 0x1f8   : > { %v1008_v16 = vpop.xlane.xlu2 %1007  ;;  %v2304_v32 = vpop.xlane.xlu1 %847 }
 0x1f9   : > { %2555 = vst [vmem:[#allocation21_spill] sm:$0xff] %v2304_v32  ;;  %v1040_v33 = vpop.xlane.xlu0 %1039  ;;  %v2307_v17 = vsel %vm1121_vm0, %v752_v55, %v1008_v16 }
 0x1fa   : > { %v2311_v45 = vsel %vm1121_vm0, %v784_v29, %v1040_v33  ;;  %v703_v29 = vmul.f32 %v639_v0, %v507_v14  ;;  %v510_v33 = vpop.f32.mrf.mxu1  ;;  %v943_v0 = vmul.f32 %v879_v15, %v459_v11  ;;  %v558_v11 = vpop.f32.mrf.mxu2 }
 0x1fd   : > { %1053 = vadd.xlane.f32.xlu1 %v959_v24  ;;  %765 = vadd.xlane.f32.xlu2 %v687_v35  ;;  %v640_v24 = vld [vmem:[%s2001_s13 + $0xf8] sm:$0xff]  ;;  %v911_v35 = vld [vmem:[%s2008_s21 + $0x170] sm:$0xff] }
 0x1fe   : > { %827 = vadd.xlane.f32.xlu0 %v718_v42  ;;  %v704_v62 = vmul.f32 %v640_v24, %v510_v33  ;;  %v975_v63 = vmul.f32 %v911_v35, %v555_v49  ;;  %v656_v35 = vld [vmem:[%s2001_s13 + $0x178] sm:$0xff] }
 0x200   : > { %v1072_v54 = vpop.xlane.xlu1 %1071  ;;  %v754_v19 = vpop.xlane.xlu2 %753 }
 0x201   : > { %v816_v55 = vpop.xlane.xlu0 %815 }
 0x202   : > { %v2320_v16 = vsel %vm1121_vm0, %v816_v55, %v1072_v54  ;;  %v896_v54 = vld [vmem:[%s2008_s21 + $0xf8] sm:$0xff]  ;;  %v462_v55 = vpop.f32.mrf.mxu0 }
 0x205   : > { %829 = vadd.xlane.f32.xlu1 %v719_v21  ;;  %861 = vadd.xlane.f32.xlu2 %v735_v28  ;;  %v880_v21 = vld [vmem:[%s2008_s21 + $0x78] sm:$0xff] }
 0x206   : > { %797 = vadd.xlane.f32.xlu0 %v703_v29  ;;  %v624_v28 = vld [vmem:[%s2001_s13 + $0x78] sm:$0xff]  ;;  %v944_v5 = vmul.f32 %v880_v21, %v462_v55  ;;  %v914_v21 = vld [vmem:[%s2008_s21 + $0x188] sm:$0xff] }
 0x208   : > { %v1042_v42 = vpop.xlane.xlu1 %1041  ;;  %v2324_v32 = vpop.xlane.xlu2 %849 }
 0x209   : > { %2556 = vst [vmem:[#allocation22_spill] sm:$0xff] %v2324_v32  ;;  %v786_v31 = vpop.xlane.xlu0 %785  ;;  %v960_v32 = vmul.f32 %v896_v54, %v510_v33  ;;  %v672_v33 = vld [vmem:[%s2001_s13 + $0x1f8] sm:$0xff]  ;;  %v720_v54 = vmul.f32 %v656_v35, %v558_v11  ;;  %v978_v35 = vmul.f32 %v914_v21, %v2072_v13 }
 0x20a   : > { %v2328_v14 = vsel %vm1121_vm0, %v786_v31, %v1042_v42  ;;  %v688_v31 = vmul.f32 %v624_v28, %v462_v55  ;;  %v2340_v42 = vpop.f32.mrf.mxu3  ;;  %v913_v28 = vld [vmem:[%s2008_s21 + $0x180] sm:$0xff]  ;;  %v920_v21 = vld [vmem:[%s2008_s21 + $0x1b8] sm:$0xff] }
 0x20d   : > { %799 = vadd.xlane.f32.xlu1 %v704_v62  ;;  %1085 = vadd.xlane.f32.xlu2 %v975_v63 }
 0x20e   : > { %1021 = vadd.xlane.f32.xlu0 %v943_v0  ;;  %v910_v0 = vld [vmem:[%s2008_s21 + $0x168] sm:$0xff] }
 0x210   : > { %v818_v29 = vpop.xlane.xlu1 %817  ;;  %v1074_v37 = vpop.xlane.xlu2 %1073 }
 0x211   : > { %v1010_v24 = vpop.xlane.xlu0 %1009  ;;  %v2334_v49 = vsel %vm1121_vm0, %v818_v29, %v1074_v37  ;;  %v912_v29 = vld [vmem:[%s2008_s21 + $0x178] sm:$0xff] }
 0x212   : > { %v2337_v15 = vsel %vm1121_vm0, %v754_v19, %v1010_v24 }
 0x215   : > { %1055 = vadd.xlane.f32.xlu2 %v960_v32  ;;  %1023 = vadd.xlane.f32.xlu1 %v944_v5  ;;  %v736_v32 = vmul.f32 %v672_v33, %v2340_v42  ;;  %v974_v5 = vmul.f32 %v910_v0, %v2299_v8  ;;  %v977_v33 = vmul.f32 %v913_v28, %v2064_v3  ;;  %v916_v0 = vld [vmem:[%s2008_s21 + $0x198] sm:$0xff]  ;;  %v919_v28 = vld [vmem:[%s2008_s21 + $0x1b0] sm:$0xff] }
 0x216   : > { %767 = vadd.xlane.f32.xlu0 %v688_v31  ;;  %v976_v8 = vmul.f32 %v912_v29, %v558_v11  ;;  %v980_v3 = vmul.f32 %v916_v0, %v2104_v4 }
 0x218   : > { %v788_v62 = vpop.xlane.xlu1 %787  ;;  %v1044_v63 = vpop.xlane.xlu2 %1043 }
 0x219   : > { %v756_v37 = vpop.xlane.xlu0 %755  ;;  %v2345_v55 = vsel %vm1121_vm0, %v788_v62, %v1044_v63  ;;  %v917_v63 = vld [vmem:[%s2008_s21 + $0x1a0] sm:$0xff] }
 0x21a   : > { %v981_v13 = vmul.f32 %v917_v63, %v2114_v20  ;;  %v983_v20 = vmul.f32 %v919_v28, %v2146_v9 }
 0x21d   : > { %831 = vadd.xlane.f32.xlu2 %v720_v54  ;;  %1083 = vadd.xlane.f32.xlu1 %v974_v5  ;;  %v915_v5 = vld [vmem:[%s2008_s21 + $0x190] sm:$0xff] }
 0x21e   : > { %863 = vadd.xlane.f32.xlu0 %v736_v32  ;;  %v979_v11 = vmul.f32 %v915_v5, %v2080_v27  ;;  %v923_v27 = vld [vmem:[%s2008_s21 + $0x1d0] sm:$0xff]  ;;  %v926_v5 = vld [vmem:[%s2008_s21 + $0x1e8] sm:$0xff] }
 0x220   : > { %v1012_v19 = vpop.xlane.xlu1 %1011  ;;  %v820_v54 = vpop.xlane.xlu2 %819 }
 0x221   : > { %v2352_v24 = vpop.xlane.xlu0 %851  ;;  %v2355_v31 = vsel %vm1121_vm0, %v756_v37, %v1012_v19 }
 0x225   : > { %1091 = vadd.xlane.f32.xlu2 %v978_v35  ;;  %1089 = vadd.xlane.f32.xlu1 %v977_v33  ;;  %v918_v35 = vld [vmem:[%s2008_s21 + $0x1a8] sm:$0xff]  ;;  %v984_v33 = vmul.f32 %v920_v21, %v2164_v36  ;;  %v987_v36 = vmul.f32 %v923_v27, %v2224_v12  ;;  %v928_v12 = vld [vmem:[%s2008_s21 + $0x1f8] sm:$0xff] }
 0x226   : > { %1087 = vadd.xlane.f32.xlu0 %v976_v8  ;;  %v982_v4 = vmul.f32 %v918_v35, %v2126_v40  ;;  %v922_v8 = vld [vmem:[%s2008_s21 + $0x1c8] sm:$0xff]  ;;  %v927_v35 = vld [vmem:[%s2008_s21 + $0x1f0] sm:$0xff] }
 0x227   : > { %v986_v9 = vmul.f32 %v922_v8, %v2209_v48  ;;  %v992_v48 = vmul.f32 %v928_v12, %v2340_v42 }
 0x228   : > { %v2359_v62 = vpop.xlane.xlu1 %757 }
 0x229   : > { %v1076_v32 = vpop.xlane.xlu0 %1075 }
 0x22a   : > { %v2365_v37 = vsel %vm1121_vm0, %v820_v54, %v1076_v32  ;;  %v921_v54 = vld [vmem:[%s2008_s21 + $0x1c0] sm:$0xff] }
 0x22b   : > { %v985_v40 = vmul.f32 %v921_v54, %v2181_v61  ;;  %v991_v61 = vmul.f32 %v927_v35, %v2313_v57 }
 0x22d   : > { %1097 = vadd.xlane.f32.xlu2 %v981_v13  ;;  %1095 = vadd.xlane.f32.xlu1 %v980_v3  ;;  %v925_v13 = vld [vmem:[%s2008_s21 + $0x1e0] sm:$0xff]  ;;  %v924_v3 = vld [vmem:[%s2008_s21 + $0x1d8] sm:$0xff] }
 0x22e   : > { %1093 = vadd.xlane.f32.xlu0 %v979_v11  ;;  %v990_v11 = vmul.f32 %v926_v5, %v2290_v44  ;;  %v989_v21 = vmul.f32 %v925_v13, %v2275_v60  ;;  %v988_v28 = vmul.f32 %v924_v3, %v2247_v52 }
 0x230   : > { %v2370_v19 = vpop.xlane.xlu1 %853 }
 0x231   : > { %v2374_v29 = vpop.xlane.xlu0 %1045 }
 0x235   : > { %1103 = vadd.xlane.f32.xlu2 %v984_v33  ;;  %1101 = vadd.xlane.f32.xlu1 %v983_v20  ;;  %v790_v33 = vpop.xlane.xlu2 %789 }
 0x236   : > { %1099 = vadd.xlane.f32.xlu0 %v982_v4 }
 0x238   : > { %v1078_v0 = vpop.xlane.xlu1 %1077 }
 0x239   : > { %v822_v63 = vpop.xlane.xlu0 %821 }
 0x23a   : > { %v2384_v32 = vsel %vm1121_vm0, %v822_v63, %v1078_v0 }
 0x23d   : > { %1109 = vadd.xlane.f32.xlu2 %v987_v36  ;;  %1107 = vadd.xlane.f32.xlu1 %v986_v9  ;;  %v1014_v20 = vpop.xlane.xlu2 %1013 }
 0x23e   : > { %1105 = vadd.xlane.f32.xlu0 %v985_v40 }
 0x240   : > { %v1048_v60 = vpop.xlane.xlu1 %1047 }
 0x241   : > { %v792_v44 = vpop.xlane.xlu0 %791 }
 0x245   : > { %1115 = vadd.xlane.f32.xlu2 %v990_v11  ;;  %1113 = vadd.xlane.f32.xlu1 %v989_v21  ;;  %v760_v52 = vpop.xlane.xlu2 %759 }
 0x246   : > { %1111 = vadd.xlane.f32.xlu0 %v988_v28 }
 0x248   : > { %v2406_v57 = vpop.xlane.xlu1 %823 }
 0x24d   : > { %1119 = vadd.xlane.f32.xlu1 %v992_v48  ;;  %v2404_v42 = vpop.xlane.xlu2 %855 }
 0x24e   : > { %1117 = vadd.xlane.f32.xlu0 %v991_v61 }
 0x26e   : > { %1186 = vxpose.xlu2.b32.start [1/16] (narrow) %v2162_v34, 8  ;;  %v1016_v34 = vpop.xlane.xlu0 %1015 }
 0x276   : > { %1187 = vxpose.xlu2.b32.cont [2/16] (narrow) %v2179_v59, 8  ;;  %v2411_v59 = vpop.xlane.xlu2 %1079 }
 0x277   : > { %1218 = vxpose.xlu0.b32.start [1/16] (narrow) %v2151_v18, 8  ;;  %v794_v18 = vpop.xlane.xlu1 %793 }
 0x27e   : > { %1188 = vxpose.xlu2.b32.cont [3/16] (narrow) %v2214_v56, 8 }
 0x27f   : > { %1219 = vxpose.xlu0.b32.cont [2/16] (narrow) %v2190_v10, 8  ;;  %v762_v10 = vpop.xlane.xlu0 %761  ;;  %v1018_v56 = vpop.xlane.xlu1 %1017 }
 0x286   : > { %1189 = vxpose.xlu2.b32.cont [4/16] (narrow) %v2231_v25, 8 }
 0x287   : > { %1220 = vxpose.xlu0.b32.cont [3/16] (narrow) %v2205_v43, 8  ;;  %1250 = vxpose.xlu1.b32.start [1/16] (narrow) %v2173_v46, 8  ;;  %v1050_v43 = vpop.xlane.xlu2 %1049  ;;  %v2422_v46 = vpop.xlane.xlu0 %857 }
 0x28e   : > { %1190 = vxpose.xlu2.b32.cont [5/16] (narrow) %v2242_v47, 8 }
 0x28f   : > { %1221 = vxpose.xlu0.b32.cont [4/16] (narrow) %v2222_v2, 8  ;;  %1251 = vxpose.xlu1.b32.cont [2/16] (narrow) %v2196_v23, 8  ;;  %v826_v2 = vpop.xlane.xlu2 %825  ;;  %v764_v23 = vpop.xlane.xlu1 %763 }
 0x290   : > { %v1082_v25 = vpop.xlane.xlu0 %1081 }
 0x291   : > { %v1166_v9 = vsel %vm1121_vm0, %v826_v2, %v1082_v25  ;;  %v2562_v25 = vld [vmem:[#allocation22_spill] sm:$0xff] }
 0x296   : > { %1191 = vxpose.xlu2.b32.cont [6/16] (narrow) %v2271_v53, 8 }
 0x297   : > { %1222 = vxpose.xlu0.b32.cont [5/16] (narrow) %v2245_v50, 8  ;;  %1252 = vxpose.xlu1.b32.cont [3/16] (narrow) %v2202_v39, 8  ;;  %v796_v39 = vpop.xlane.xlu2 %795  ;;  %v2427_v47 = vpop.xlane.xlu1 %859 }
 0x29e   : > { %1192 = vxpose.xlu2.b32.cont [7/16] (narrow) %v2288_v38, 8  ;;  %v1133_v38 = vsel %vm1121_vm0, %v760_v52, %v1016_v34  ;;  %v2559_v34 = vld [vmem:[#allocation19_spill] sm:$0xff] }
 0x29f   : > { %1223 = vxpose.xlu0.b32.cont [6/16] (narrow) %v2262_v22, 8  ;;  %1253 = vxpose.xlu1.b32.cont [4/16] (narrow) %v2234_v26, 8  ;;  %v1052_v26 = vpop.xlane.xlu0 %1051  ;;  %v1020_v50 = vpop.xlane.xlu2 %1019 }
 0x2a0   : > { %v1054_v22 = vpop.xlane.xlu1 %1053  ;;  %v1151_v63 = vsel %vm1121_vm0, %v796_v39, %v1052_v26 }
 0x2a6   : > { %1193 = vxpose.xlu2.b32.cont [8/16] (narrow) %v2307_v17, 8  ;;  %v1148_v17 = vsel %vm1121_vm0, %v790_v33, %v2374_v29 }
 0x2a7   : > { %1224 = vxpose.xlu0.b32.cont [7/16] (narrow) %v2279_v58, 8  ;;  %1254 = vxpose.xlu1.b32.cont [5/16] (narrow) %v2254_v6, 8  ;;  %v1132_v6 = vsel %vm1121_vm0, %v2359_v62, %v1014_v20  ;;  %v828_v53 = vpop.xlane.xlu0 %827  ;;  %v766_v58 = vpop.xlane.xlu2 %765  ;;  %v1135_v62 = vsel %vm1121_vm0, %v764_v23, %v1020_v50  ;;  %v2557_v20 = vld [vmem:[#allocation17_spill] sm:$0xff] }
 0x2ae   : > { %1194 = vxpose.xlu2.b32.cont [9/16] (narrow) %v2337_v15, 8  ;;  %v1134_v15 = vsel %vm1121_vm0, %v762_v10, %v1018_v56  ;;  %v2561_v56 = vld [vmem:[#allocation21_spill] sm:$0xff] }
 0x2af   : > { %1225 = vxpose.xlu0.b32.cont [8/16] (narrow) %v2311_v45, 8  ;;  %1255 = vxpose.xlu1.b32.cont [6/16] (narrow) %v2268_v51, 8  ;;  %v830_v51 = vpop.xlane.xlu1 %829  ;;  %v2443_v45 = vpop.xlane.xlu2 %861 }
 0x2b6   : > { %1195 = vxpose.xlu2.b32.cont [10/16] (narrow) %v2355_v31, 8 }
 0x2b7   : > { %1226 = vxpose.xlu0.b32.cont [9/16] (narrow) %v2328_v14, 8  ;;  %1256 = vxpose.xlu1.b32.cont [7/16] (narrow) %v2297_v7, 8  ;;  %v798_v7 = vpop.xlane.xlu0 %797  ;;  %v800_v14 = vpop.xlane.xlu1 %799 }
 0x2b8   : > { %v1086_v31 = vpop.xlane.xlu2 %1085 }
 0x2b9   : > { %v1168_v48 = vsel %vm1121_vm0, %v830_v51, %v1086_v31 }
 0x2be   : > { %1196 = vxpose.xlu2.b32.cont [11/16] (narrow) %v1132_v6, 8 }
 0x2bf   : > { %1227 = vxpose.xlu0.b32.cont [10/16] (narrow) %v2345_v55, 8  ;;  %1257 = vxpose.xlu1.b32.cont [8/16] (narrow) %v2320_v16, 8  ;;  %v1149_v16 = vsel %vm1121_vm0, %v792_v44, %v1048_v60  ;;  %v1022_v55 = vpop.xlane.xlu0 %1021  ;;  %v1024_v29 = vpop.xlane.xlu1 %1023  ;;  %v2558_v44 = vld [vmem:[#allocation18_spill] sm:$0xff] }
 0x2c0   : > { %v1136_v27 = vsel %vm1121_vm0, %v766_v58, %v1022_v55  ;;  %v1056_v8 = vpop.xlane.xlu2 %1055 }
 0x2c1   : > { %v1153_v3 = vsel %vm1121_vm0, %v800_v14, %v1056_v8 }
 0x2c6   : > { %1197 = vxpose.xlu2.b32.cont [12/16] (narrow) %v1133_v38, 8 }
 0x2c7   : > { %1228 = vxpose.xlu0.b32.cont [11/16] (narrow) %v1148_v17, 8  ;;  %1258 = vxpose.xlu1.b32.cont [9/16] (narrow) %v2334_v49, 8  ;;  %v1150_v49 = vsel %vm1121_vm0, %v794_v18, %v1050_v43  ;;  %v768_v4 = vpop.xlane.xlu0 %767  ;;  %v1084_v0 = vpop.xlane.xlu1 %1083  ;;  %v2560_v18 = vld [vmem:[#allocation20_spill] sm:$0xff] }
 0x2c8   : > { %v1137_v54 = vsel %vm1121_vm0, %v768_v4, %v1024_v29  ;;  %v832_v40 = vpop.xlane.xlu2 %831  ;;  %v1167_v11 = vsel %vm1121_vm0, %v828_v53, %v1084_v0 }
 0x2ce   : > { %1198 = vxpose.xlu2.b32.cont [13/16] (narrow) %v1134_v15, 8 }
 0x2cf   : > { %1229 = vxpose.xlu0.b32.cont [12/16] (narrow) %v1149_v16, 8  ;;  %1259 = vxpose.xlu1.b32.cont [10/16] (narrow) %v2365_v37, 8  ;;  %v1165_v37 = vsel %vm1121_vm0, %v2406_v57, %v2411_v59  ;;  %v2457_v36 = vpop.xlane.xlu0 %863  ;;  %v1090_v5 = vpop.xlane.xlu1 %1089 }
 0x2d0   : > { %v1170_v13 = vsel %vm1121_vm0, %v2158_v30, %v1090_v5  ;;  %v1092_v28 = vpop.xlane.xlu2 %1091 }
 0x2d1   : > { %v1171_v12 = vsel %vm1121_vm0, %v2168_v41, %v1092_v28 }
 0x2d6   : > { %1199 = vxpose.xlu2.b32.cont [14/16] (narrow) %v1135_v62, 8 }
 0x2d7   : > { %1230 = vxpose.xlu0.b32.cont [13/16] (narrow) %v1150_v49, 8  ;;  %1260 = vxpose.xlu1.b32.cont [11/16] (narrow) %v2384_v32, 8  ;;  %v1152_v32 = vsel %vm1121_vm0, %v798_v7, %v1054_v22  ;;  %v1088_v21 = vpop.xlane.xlu0 %1087  ;;  %v1096_v33 = vpop.xlane.xlu1 %1095 }
 0x2d8   : > { %v1169_v61 = vsel %vm1121_vm0, %v832_v40, %v1088_v21  ;;  %v1173_v52 = vsel %vm1121_vm0, %v2557_v20, %v1096_v33  ;;  %v1098_v60 = vpop.xlane.xlu2 %1097 }
 0x2d9   : > { %v1174_v41 = vsel %vm1121_vm0, %v2558_v44, %v1098_v60 }
 0x2de   : > { %1200 = vxpose.xlu2.b32.cont [15/16] (narrow) %v1136_v27, 8 }
 0x2df   : > { %1231 = vxpose.xlu0.b32.cont [14/16] (narrow) %v1151_v63, 8  ;;  %1261 = vxpose.xlu1.b32.cont [12/16] (narrow) %v1165_v37, 8  ;;  %v1094_v35 = vpop.xlane.xlu0 %1093 }
 0x2e0   : > { %v1172_v30 = vsel %vm1121_vm0, %v2186_v1, %v1094_v35  ;;  %v1102_v1 = vpop.xlane.xlu1 %1101  ;;  %v1104_v43 = vpop.xlane.xlu2 %1103 }
 0x2e1   : > { %v1176_v10 = vsel %vm1121_vm0, %v2560_v18, %v1102_v1  ;;  %v1177_v2 = vsel %vm1121_vm0, %v2561_v56, %v1104_v43 }
 0x2e6   : > { %1201 = vxpose.xlu2.b32.end [16/16] (narrow) %v1137_v54, 8 }
 0x2e7   : > { %1232 = vxpose.xlu0.b32.cont [15/16] (narrow) %v1152_v32, 8  ;;  %1262 = vxpose.xlu1.b32.cont [13/16] (narrow) %v1166_v9, 8  ;;  %v1100_v57 = vpop.xlane.xlu0 %1099 }
 0x2e8   : > { %v1175_v59 = vsel %vm1121_vm0, %v2559_v34, %v1100_v57  ;;  %v1108_v26 = vpop.xlane.xlu1 %1107  ;;  %v1110_v22 = vpop.xlane.xlu2 %1109 }
 0x2e9   : > { %v1179_v50 = vsel %vm1121_vm0, %v2352_v24, %v1108_v26  ;;  %v1180_v6 = vsel %vm1121_vm0, %v2370_v19, %v1110_v22 }
 0x2ee   : > { %1282 = vxpose.xlu2.b32.start [1/16] (narrow) %v1170_v13, 8 }
 0x2ef   : > { %1233 = vxpose.xlu0.b32.end [16/16] (narrow) %v1153_v3, 8  ;;  %1263 = vxpose.xlu1.b32.cont [14/16] (narrow) %v1167_v11, 8  ;;  %v1106_v23 = vpop.xlane.xlu0 %1105 }
 0x2f0   : > { %v1178_v39 = vsel %vm1121_vm0, %v2562_v25, %v1106_v23  ;;  %v1114_v51 = vpop.xlane.xlu1 %1113  ;;  %v1116_v17 = vpop.xlane.xlu2 %1115 }
 0x2f1   : > { %v1182_v38 = vsel %vm1121_vm0, %v2422_v46, %v1114_v51  ;;  %v1183_v24 = vsel %vm1121_vm0, %v2427_v47, %v1116_v17 }
 0x2f6   : > { %1283 = vxpose.xlu2.b32.cont [2/16] (narrow) %v1171_v12, 8 }
 0x2f7   : > { %1264 = vxpose.xlu1.b32.cont [15/16] (narrow) %v1168_v48, 8  ;;  %v1112_v53 = vpop.xlane.xlu0 %1111 }
 0x2f8   : > { %v1181_v58 = vsel %vm1121_vm0, %v2404_v42, %v1112_v53  ;;  %v1120_v14 = vpop.xlane.xlu1 %1119 }
 0x2f9   : > { %v1185_v42 = vsel %vm1121_vm0, %v2457_v36, %v1120_v14 }
 0x2fe   : > { %1284 = vxpose.xlu2.b32.cont [3/16] (narrow) %v1172_v30, 8 }
 0x2ff   : > { %1265 = vxpose.xlu1.b32.end [16/16] (narrow) %v1169_v61, 8  ;;  %v1118_v7 = vpop.xlane.xlu0 %1117 }
 0x300   : > { %v1184_v19 = vsel %vm1121_vm0, %v2443_v45, %v1118_v7 }
 0x306   : > { %1285 = vxpose.xlu2.b32.cont [4/16] (narrow) %v1173_v52, 8 }
 0x307   : > { %v1202_v15 = vpop.trf.xlu2 }
 0x30e   : > { %1286 = vxpose.xlu2.b32.cont [5/16] (narrow) %v1174_v41, 8 }
 0x316   : > { %1287 = vxpose.xlu2.b32.cont [6/16] (narrow) %v1175_v59, 8 }
 0x31b   : > { %v1234_v46 = vpop.trf.xlu0 }
 0x31c   : > { %v1318_v47 = vrot.slane %v1234_v46, 6 }
 0x31e   : > { %1288 = vxpose.xlu2.b32.cont [7/16] (narrow) %v1176_v10, 8  ;;  %v1322_v62 = vsel %vm1321_vm1, %v1202_v15, %v1318_v47 }
 0x326   : > { %1289 = vxpose.xlu2.b32.cont [8/16] (narrow) %v1177_v2, 8 }
 0x32b   : > { %v1266_v16 = vpop.trf.xlu1 }
 0x32c   : > { %v1319_v55 = vrot.slane %v1266_v16, 4 }
 0x32e   : > { %1290 = vxpose.xlu2.b32.cont [9/16] (narrow) %v1178_v39, 8 }
 0x336   : > { %1291 = vxpose.xlu2.b32.cont [10/16] (narrow) %v1179_v50, 8 }
 0x33e   : > { %1292 = vxpose.xlu2.b32.cont [11/16] (narrow) %v1180_v6, 8 }
 0x346   : > { %1293 = vxpose.xlu2.b32.cont [12/16] (narrow) %v1181_v58, 8 }
 0x34e   : > { %1294 = vxpose.xlu2.b32.cont [13/16] (narrow) %v1182_v38, 8 }
 0x356   : > { %1295 = vxpose.xlu2.b32.cont [14/16] (narrow) %v1183_v24, 8 }
 0x35e   : > { %1296 = vxpose.xlu2.b32.cont [15/16] (narrow) %v1184_v19, 8 }
 0x366   : > { %1297 = vxpose.xlu2.b32.end [16/16] (narrow) %v1185_v42, 8 }
 0x387   : > { %v1298_v45 = vpop.trf.xlu2 }
 0x388   : > { %v1320_v31 = vrot.slane %v1298_v45, 2 }
 0x38a   : > { %v1324_v29 = vsel %vm1323_vm2, %v1319_v55, %v1320_v31 }
 0x38b   : > { %v1326_v49 = vsel %vm1325_vm3, %v1322_v62, %v1324_v29 }
 0x38c   : > { %1328 = vst [vmem:[%s315_s3] sm:$0xff] %v1326_v49 }
 0x38d   : > { %1761 = shalt.err (!%p1758_p5)
}
 0x38e   : > { %1555 = dma.vmem_to_hbm [thread:$0]  (%p1930_p11), %s1344_s22, 128, %s1346_s20, %s1330_s28  }
 0x38f PF: > { %s1357_s24 = sand.u32 1, %s1796_s15   ;;  %p2563_p7 = scmp.ge.s32.totalorder %s1808_s18, 2 }
 0x390   : > { %s1358_s13 = scalar_lea.sflag [#allocation4], %s1357_s24 }
 0x391   : > { %p1572_p10 = pnand %p2563_p7, %p1934_p12 }
 0x393   : > { %p1573_p13 = pneg %p1572_p10 }
 0x395   : > { %1791 = dma.done.wait (%p1573_p13), %s1358_s13, 128  }
 0x396   : > { %1793 = vsyncadd (%p1573_p13), %s1358_s13, 4294967168  ;;  %s2564_s18 = sld [smem:[#allocation15_spill]]  ;;  %s2566_s15 = smov %s1800_s16 }
 0x397   : > { %s2565_s26 = sld [smem:[#allocation16_spill]]  ;;  %s2567_s16 = smov %s1804_s17 }
 0x39c   : > { %p21_p0 = scmp.ge.s32.totalorder %s2564_s18, 4  }
 0x39d   : > { %s2568_s17 = smov %s2565_s26 }
 0x39e   :  { %23 = sbr.rel (!%p21_p0) target bundleno = 11 (0xb), region = 109 }
 0x3a3   :  { %1364 = vsyncpa [#allocation3], 1 }
 0x3a4   :  { %1366 = vsyncpa [#allocation3 + $0x1], 1 }
 0x3a5   :  { %1367 = vsyncpa [#allocation6], 1 }
 0x3a6   :  { %1369 = vsyncpa [#allocation6 + $0x1], 1 }
 0x3a7   :  { %1370 = vsyncpa [#allocation9], 1 }
 0x3a8   :  { %1371 = vsyncpa [#allocation4], 1 }
 0x3a9   :  { %1373 = vsyncpa [#allocation4 + $0x1], 1 }

</bundles_post_ra>
